<compile_context>
chip_gen: v6e
topology: v6e:2x2x1
jax: 0.10.0
libtpu: 0.0.40
codegen_flags: <defaults>
</compile_context>

<pallas_src>
import jax
import jax.numpy as jnp
from jax import lax
from jax.experimental import pallas as pl
from jax.experimental.pallas import tpu as pltpu

N_BATCH = 2
W_IN = 30            # conv input width -> 120*9 = 1080 flat feats = Linear(1080,500)
_X0_LANES = 32       # x0 zero-padded to 32 lanes (matches W_conv's 32 rows)

# ---------------------------------------------------------------------------
# Folded-conv buffer (bf16, HBM -> manual DMA):  (48, 2304)
#   rows [0,32)  : W_conv   (rows 30..31 zero)
#   row   32     : b_conv
# Column layout: col = tap*1152 + k*120 + c   (tap in {0,1}, k = pooled width
# position 0..8, c = channel 0..119); cols [1080,1152) and [2232,2304) zero.
# maxpool((1,2),s2)  ==  max over tap  ==  max(co[:, :1152], co[:, 1152:]).
# ---------------------------------------------------------------------------
_CONV_LANES = 2304
_HALF = 1152
_WC_ROWS = 32
_BC_ROW = 32
_WC_TOT_ROWS = 48

# ---------------------------------------------------------------------------
# fc buffer (bf16, HBM -> manual DMA, 2 chunked copies): (1232, 512)
#   rows [0,1152)     : fc1 weight, input axis permuted to the pooled
#                       (k*120 + c) order; rows >=1080 and cols >=500 zero.
#   row   1152        : fc1 bias
#   rows [1168, 1232) : fc2 weight stored transposed (60,500), rows>=60 zero
# ---------------------------------------------------------------------------
_FC_ROWS = 1232
_FC_K0 = 512          # first K-chunk of the fc1 weight (lane-aligned)
_BF1_ROW = 1152
_WF2_OFF = 1168
_WF2_ROWS = 64

# ---------------------------------------------------------------------------
# Small f32 packed buffer (128, 128): dense layout, name -> (row, col, R, C)
# (R, C) are the dims the KERNEL reads; real data may be smaller (zero pad).
# ---------------------------------------------------------------------------
_SMALL_LAYOUT = {
    'wl1':  (0,    0, 27,  27),
    'wl2':  (0,   32, 27,  20),
    'wl3':  (0,   64, 20,  12),
    'wa1t': (0,   80, 12,  40),
    'wa1b': (32,   0, 64,  40),   # rows 60..63 zero (matches padded logits2)
    'wa2':  (32,  48, 40,  20),
    'wa3':  (96,   0, 20, 128),   # (20,7) zero-padded -> lane-dense output
    'bl1':  (120,  0,  1,  27),
    'bl2':  (121,  0,  1,  20),
    'bl3':  (122,  0,  1,  12),
    'bf2':  (123,  0,  1,  64),
    'ba1':  (124,  0,  1,  40),
    'ba2':  (125,  0,  1,  20),
    'ba3':  (126,  0,  1, 128),
}
_SMALL_ROWS = 128


def _p(ref, name):
    r, c, nr, nc = _SMALL_LAYOUT[name]
    return ref[r:r + nr, c:c + nc]


def forward_kernel(x0_ref, x1_ref, pa_ref, conv_hbm, fc_hbm, out_ref,
                   conv_vmem, fc_vmem, sem):
    f32 = jnp.float32
    bf16 = jnp.bfloat16

    def relu(v):
        return jnp.maximum(v, 0.0)

    # Kick off every big-weight transfer immediately; they overlap with the
    # linear_relu_stack (conv buf) and the conv/pool compute (fc chunks).
    conv_cp = pltpu.make_async_copy(conv_hbm, conv_vmem, sem.at[0])
    fc_cp0 = pltpu.make_async_copy(fc_hbm.at[0:_FC_K0],
                                   fc_vmem.at[0:_FC_K0], sem.at[1])
    fc_cp1 = pltpu.make_async_copy(fc_hbm.at[_FC_K0:_FC_ROWS],
                                   fc_vmem.at[_FC_K0:_FC_ROWS], sem.at[2])
    conv_cp.start()
    fc_cp0.start()
    fc_cp1.start()

    # ----------------- linear_relu_stack branch (small f32 weights) --------
    x1 = x1_ref[...]                                                # (n, 27)
    a = relu(jnp.dot(x1, _p(pa_ref, 'wl1'), preferred_element_type=f32)
             + _p(pa_ref, 'bl1'))
    a = relu(jnp.dot(a, _p(pa_ref, 'wl2'), preferred_element_type=f32)
             + _p(pa_ref, 'bl2'))
    logits1 = relu(jnp.dot(a, _p(pa_ref, 'wl3'), preferred_element_type=f32)
                   + _p(pa_ref, 'bl3'))                             # (n, 12)

    # ----------------- conv_stack branch: folded conv chain -----------------
    conv_cp.wait()
    x0 = x0_ref[...].astype(bf16)                                   # (n, 32)
    wconv = conv_vmem[0:_WC_ROWS, :]                                # (32, 2304)
    bconv = conv_vmem[_BC_ROW:_BC_ROW + 1, :].astype(f32)           # (1, 2304)
    co = jnp.dot(x0, wconv, preferred_element_type=f32) + bconv     # (n, 2304)
    # MaxPool2d((1,2), stride=2): lane-aligned even/odd-tap max.
    pooled = jnp.maximum(co[:, 0:_HALF], co[:, _HALF:2 * _HALF])    # (n, 1152)

    # fc1 with chunked K so the matmul starts before the full weight landed.
    fc_cp0.wait()
    acc = jnp.dot(pooled[:, 0:_FC_K0].astype(bf16), fc_vmem[0:_FC_K0, :],
                  preferred_element_type=f32)
    fc_cp1.wait()
    acc = acc + jnp.dot(pooled[:, _FC_K0:_HALF].astype(bf16),
                        fc_vmem[_FC_K0:_HALF, :],
                        preferred_element_type=f32)
    zfc = relu(acc + fc_vmem[_BF1_ROW:_BF1_ROW + 1, :].astype(f32))  # (n, 512)

    # fc2 with transposed RHS (contraction on rhs dim 1 -> MXU-native).
    wf2t = fc_vmem[_WF2_OFF:_WF2_OFF + _WF2_ROWS, :]                 # (64, 512)
    logits2 = relu(
        lax.dot_general(zfc.astype(bf16), wf2t,
                        dimension_numbers=(((1,), (1,)), ((), ())),
                        preferred_element_type=f32)
        + _p(pa_ref, 'bf2'))                                         # (n, 64); cols>=60 are 0

    # ----------------- aggregation head -------------------------------------
    # cat([logits1, logits2]) @ wa1 computed as two dots on the split weight.
    g = relu(jnp.dot(logits1, _p(pa_ref, 'wa1t'), preferred_element_type=f32)
             + jnp.dot(logits2, _p(pa_ref, 'wa1b'), preferred_element_type=f32)
             + _p(pa_ref, 'ba1'))
    g = relu(jnp.dot(g, _p(pa_ref, 'wa2'), preferred_element_type=f32)
             + _p(pa_ref, 'ba2'))
    # wa3/ba3 zero-padded to 128 lanes -> one unmasked lane-dense store.
    out_ref[...] = relu(jnp.dot(g, _p(pa_ref, 'wa3'), preferred_element_type=f32)
                        + _p(pa_ref, 'ba3'))


# ---------------------------------------------------------------------------
# One-time parameter repacking (wrapper side).
# ---------------------------------------------------------------------------
def pack_params(p):
    f32, bf16 = jnp.float32, jnp.bfloat16
    dn = ('NCHW', 'OIHW', 'NCHW')

    def t(w):                       # PyTorch Linear weight (out, in) -> (in, out)
        return jnp.asarray(w, f32).T

    def row(b):
        return jnp.asarray(b, f32).reshape(1, -1)

    def conv(h, w, b, stride, pad):
        out = lax.conv_general_dilated(h, jnp.asarray(w, f32), (stride, stride),
                                       [(0, 0), (pad, pad)],
                                       dimension_numbers=dn)
        if b is not None:
            out = out + jnp.asarray(b, f32).reshape(1, -1, 1, 1)
        return out

    def conv_chain(x, with_bias):
        def b(k):
            return jnp.asarray(p[k], f32) if with_bias else None
        h = conv(x, p['conv1_w'], b('conv1_b'), 1, 0)
        h = conv(h, p['conv2_w'], b('conv2_b'), 2, 1)
        h = conv(h, p['conv3_w'], b('conv3_b'), 1, 1)
        h = conv(h, p['conv4_w'], b('conv4_b'), 1, 1)
        return h                                        # (N, 120, 1, 18)

    # The conv chain is linear: composite weight = response to a width basis,
    # composite bias = response to the zero input (with biases on).
    basis = jnp.eye(W_IN, dtype=f32).reshape(W_IN, 1, 1, W_IN)
    wlin = conv_chain(basis, False)[:, :, 0, :]                     # (30,120,18)
    blin = conv_chain(jnp.zeros((1, 1, 1, W_IN), f32), True)[0, :, 0, :]  # (120,18)

    def wide(tap):      # (30, 1080) with col = k*120 + c, width pos = 2k+tap
        return wlin[:, :, tap::2].transpose(0, 2, 1).reshape(W_IN, 1080)

    def bwide(tap):
        return blin[:, tap::2].T.reshape(1080)

    conv_buf = jnp.zeros((_WC_TOT_ROWS, _CONV_LANES), f32)
    conv_buf = conv_buf.at[0:W_IN, 0:1080].set(wide(0))
    conv_buf = conv_buf.at[0:W_IN, _HALF:_HALF + 1080].set(wide(1))
    conv_buf = conv_buf.at[_BC_ROW, 0:1080].set(bwide(0))
    conv_buf = conv_buf.at[_BC_ROW, _HALF:_HALF + 1080].set(bwide(1))
    conv_buf = conv_buf.astype(bf16)

    # fc1 weight: permute input axis from NCHW flatten order (c*9 + k) to the
    # kernel's pooled layout order (k*120 + c).
    wf1 = (t(p['fc1_w']).reshape(120, 9, 500).transpose(1, 0, 2).reshape(1080, 500))
    fc_buf = jnp.zeros((_FC_ROWS, 512), f32)
    fc_buf = fc_buf.at[0:1080, 0:500].set(wf1)
    fc_buf = fc_buf.at[_BF1_ROW, 0:500].set(jnp.asarray(p['fc1_b'], f32))
    fc_buf = fc_buf.at[_WF2_OFF:_WF2_OFF + 60, 0:500].set(jnp.asarray(p['fc2_w'], f32))
    fc_buf = fc_buf.astype(bf16)

    # Small f32 buffer.
    wa1 = t(p['a1_w'])                          # (72, 40); cat order = (logits1, logits2)
    vals = {
        'wl1': t(p['l1_w']), 'wl2': t(p['l2_w']), 'wl3': t(p['l3_w']),
        'wa1t': wa1[:12, :], 'wa1b': wa1[12:, :],
        'wa2': t(p['a2_w']), 'wa3': t(p['a3_w']),
        'bl1': row(p['l1_b']), 'bl2': row(p['l2_b']), 'bl3': row(p['l3_b']),
        'bf2': row(p['fc2_b']),
        'ba1': row(p['a1_b']), 'ba2': row(p['a2_b']), 'ba3': row(p['a3_b']),
    }
    small = jnp.zeros((_SMALL_ROWS, 128), f32)
    for name, v in vals.items():
        r, c, _, _ = _SMALL_LAYOUT[name]
        small = small.at[r:r + v.shape[0], c:c + v.shape[1]].set(v)

    return {'small': small, 'conv': conv_buf, 'fc': fc_buf}


def neural_network_forward(x0_nchw, x1, packed):
    n = x0_nchw.shape[0]
    x0 = jnp.pad(x0_nchw.reshape(n, W_IN).astype(jnp.float32),
                 ((0, 0), (0, _X0_LANES - W_IN)))
    x1 = x1.reshape(n, -1).astype(jnp.float32)

    flops = 2 * n * (_X0_LANES * _CONV_LANES + _HALF * 512 + 512 * _WF2_ROWS
                     + 27 * 27 + 27 * 20 + 20 * 12
                     + 12 * 40 + 64 * 40 + 40 * 20 + 20 * 128)
    bytes_accessed = (packed['conv'].size * 2 + packed['fc'].size * 2
                      + packed['small'].size * 4
                      + x0.size * 4 + x1.size * 4 + n * 128 * 4)

    vmem = pltpu.MemorySpace.VMEM
    out = pl.pallas_call(
        forward_kernel,
        out_shape=jax.ShapeDtypeStruct((n, 128), jnp.float32),
        in_specs=[
            pl.BlockSpec(memory_space=vmem),     # x0 (lane-padded)
            pl.BlockSpec(memory_space=vmem),     # x1
            pl.BlockSpec(memory_space=vmem),     # packed small params (1 DMA)
            pl.BlockSpec(memory_space=pl.ANY),   # folded conv weights (manual DMA)
            pl.BlockSpec(memory_space=pl.ANY),   # fc1/fc2 weights (manual, chunked)
        ],
        out_specs=pl.BlockSpec(memory_space=vmem),
        scratch_shapes=[
            pltpu.VMEM((_WC_TOT_ROWS, _CONV_LANES), jnp.bfloat16),
            pltpu.VMEM((_FC_ROWS, 512), jnp.bfloat16),
            pltpu.SemaphoreType.DMA((3,)),
        ],
        cost_estimate=pl.CostEstimate(flops=int(flops), transcendentals=0,
                                      bytes_accessed=int(bytes_accessed)),
    )(x0, x1, packed['small'], packed['conv'], packed['fc'])
    return out[:, :7]


# ----------------- deterministic parameter init -----------------
def init_params(key):
    shapes = {
        'conv1_w': (40, 1, 1, 1), 'conv1_b': (40,),
        'conv2_w': (80, 40, 1, 2), 'conv2_b': (80,),
        'conv3_w': (100, 80, 1, 2), 'conv3_b': (100,),
        'conv4_w': (120, 100, 1, 2), 'conv4_b': (120,),
        'fc1_w': (500, 1080), 'fc1_b': (500,),
        'fc2_w': (60, 500), 'fc2_b': (60,),
        'l1_w': (27, 27), 'l1_b': (27,),
        'l2_w': (20, 27), 'l2_b': (20,),
        'l3_w': (12, 20), 'l3_b': (12,),
        'a1_w': (40, 72), 'a1_b': (40,),
        'a2_w': (20, 40), 'a2_b': (20,),
        'a3_w': (7, 20), 'a3_b': (7,),
    }
    items = sorted(shapes.items())
    keys = jax.random.split(key, len(items))
    params = {}
    for (name, shape), k in zip(items, keys):
        if name.endswith('_w'):
            fan_in = 1
            for d in shape[1:]:
                fan_in *= d
            scale = 1.0 / (fan_in ** 0.5)
        else:
            scale = 0.01
        params[name] = scale * jax.random.normal(k, shape, jnp.float32)
    return params


# ----------------- pure-JAX reference (for validation only) -----------------
def reference_forward(x0, x1, p):
    dn = ('NCHW', 'OIHW', 'NCHW')

    def conv(h, w, b, stride, pad):
        out = lax.conv_general_dilated(h, w, (stride, stride),
                                       [(0, 0), (pad, pad)],
                                       dimension_numbers=dn)
        return out + b.reshape(1, -1, 1, 1)

    h = conv(x0, p['conv1_w'], p['conv1_b'], 1, 0)
    h = conv(h, p['conv2_w'], p['conv2_b'], 2, 1)
    h = conv(h, p['conv3_w'], p['conv3_b'], 1, 1)
    h = conv(h, p['conv4_w'], p['conv4_b'], 1, 1)
    h = lax.reduce_window(h, -jnp.inf, lax.max, (1, 1, 1, 2), (1, 1, 2, 2), 'VALID')
    flat = h.reshape(h.shape[0], -1)
    z = jax.nn.relu(flat @ p['fc1_w'].T + p['fc1_b'])
    logits2 = jax.nn.relu(z @ p['fc2_w'].T + p['fc2_b'])
    a = jax.nn.relu(x1.reshape(x1.shape[0], -1) @ p['l1_w'].T + p['l1_b'])
    a = jax.nn.relu(a @ p['l2_w'].T + p['l2_b'])
    logits1 = jax.nn.relu(a @ p['l3_w'].T + p['l3_b'])
    cat = jnp.concatenate([logits1, logits2], axis=1)
    g = jax.nn.relu(cat @ p['a1_w'].T + p['a1_b'])
    g = jax.nn.relu(g @ p['a2_w'].T + p['a2_b'])
    return jax.nn.relu(g @ p['a3_w'].T + p['a3_b'])


if __name__ == "__main__":
    key = jax.random.PRNGKey(0)
    kp, k0, k1 = jax.random.split(key, 3)
    params = init_params(kp)
    x0 = jax.random.normal(k0, (N_BATCH, 1, 1, W_IN), jnp.float32)  # x[0] (NCHW)
    x1 = jax.random.normal(k1, (N_BATCH, 27), jnp.float32)          # x[1]

    packed = pack_params(params)          # one-time weight repacking / folding
    out = neural_network_forward(x0, x1, packed)
    out = jax.block_until_ready(out)
    assert out.shape == (N_BATCH, 7), out.shape

    ref = reference_forward(x0, x1, params)
    # The folded conv weights and fc1/fc2 weights are stored bf16 inside the
    # kernel (they dominate the HBM traffic); everything else is f32, so a
    # few-percent agreement vs the all-f32 reference is the expected accuracy.
    if not jnp.allclose(out, ref, rtol=3e-2, atol=3e-2):
        raise AssertionError(f"mismatch: max abs err {jnp.max(jnp.abs(out - ref))}")

    print("KERNEL_OK")
</pallas_src>

<mosaic_0001>
module attributes {stable_mosaic.version = 11 : i64} {
  func.func @forward_kernel(%arg0: memref<2x32xf32, #tpu.memory_space<vmem>>, %arg1: memref<2x27xf32, #tpu.memory_space<vmem>>, %arg2: memref<128x128xf32, #tpu.memory_space<vmem>>, %arg3: memref<48x2304xbf16, #tpu.memory_space<any>>, %arg4: memref<1232x512xbf16, #tpu.memory_space<any>>, %arg5: memref<2x128xf32, #tpu.memory_space<vmem>>, %arg6: memref<48x2304xbf16, #tpu.memory_space<vmem>>, %arg7: memref<1232x512xbf16, #tpu.memory_space<vmem>>, %arg8: memref<3x!tpu.dma_semaphore, #tpu.memory_space<semaphore_mem>>) attributes {dimension_semantics = [], scalar_prefetch = 0 : i64, scratch_operands = 3 : i64, tpu.core_type = #tpu.core_type<tc>} {
    %c0_i32 = arith.constant 0 : i32
    %0 = tpu.memref_slice %arg8[%c0_i32] : memref<3x!tpu.dma_semaphore, #tpu.memory_space<semaphore_mem>> -> memref<1x!tpu.dma_semaphore, #tpu.memory_space<semaphore_mem>>
    %1 = tpu.memref_squeeze %0 : memref<1x!tpu.dma_semaphore, #tpu.memory_space<semaphore_mem>> -> memref<!tpu.dma_semaphore, #tpu.memory_space<semaphore_mem>>
    tpu.enqueue_dma source(%arg3 : memref<48x2304xbf16, #tpu.memory_space<any>>) target(%arg6 : memref<48x2304xbf16, #tpu.memory_space<vmem>>) target_semaphore(%1 : memref<!tpu.dma_semaphore, #tpu.memory_space<semaphore_mem>>)
    %c1_i32 = arith.constant 1 : i32
    %c0_i32_0 = arith.constant 0 : i32
    %c0_i32_1 = arith.constant 0 : i32
    %2 = tpu.memref_slice %arg4[%c0_i32_0, %c0_i32_1] : memref<1232x512xbf16, #tpu.memory_space<any>> -> memref<512x512xbf16, #tpu.memory_space<any>>
    %c0_i32_2 = arith.constant 0 : i32
    %c0_i32_3 = arith.constant 0 : i32
    %3 = tpu.memref_slice %arg7[%c0_i32_2, %c0_i32_3] : memref<1232x512xbf16, #tpu.memory_space<vmem>> -> memref<512x512xbf16, #tpu.memory_space<vmem>>
    %4 = tpu.memref_slice %arg8[%c1_i32] : memref<3x!tpu.dma_semaphore, #tpu.memory_space<semaphore_mem>> -> memref<1x!tpu.dma_semaphore, #tpu.memory_space<semaphore_mem>>
    %5 = tpu.memref_squeeze %4 : memref<1x!tpu.dma_semaphore, #tpu.memory_space<semaphore_mem>> -> memref<!tpu.dma_semaphore, #tpu.memory_space<semaphore_mem>>
    tpu.enqueue_dma source(%2 : memref<512x512xbf16, #tpu.memory_space<any>>) target(%3 : memref<512x512xbf16, #tpu.memory_space<vmem>>) target_semaphore(%5 : memref<!tpu.dma_semaphore, #tpu.memory_space<semaphore_mem>>)
    %c2_i32 = arith.constant 2 : i32
    %c512_i32 = arith.constant 512 : i32
    %c0_i32_4 = arith.constant 0 : i32
    %6 = tpu.memref_slice %arg4[%c512_i32, %c0_i32_4] : memref<1232x512xbf16, #tpu.memory_space<any>> -> memref<720x512xbf16, #tpu.memory_space<any>>
    %c512_i32_5 = arith.constant 512 : i32
    %c0_i32_6 = arith.constant 0 : i32
    %7 = tpu.memref_slice %arg7[%c512_i32_5, %c0_i32_6] : memref<1232x512xbf16, #tpu.memory_space<vmem>> -> memref<720x512xbf16, #tpu.memory_space<vmem>>
    %8 = tpu.memref_slice %arg8[%c2_i32] : memref<3x!tpu.dma_semaphore, #tpu.memory_space<semaphore_mem>> -> memref<1x!tpu.dma_semaphore, #tpu.memory_space<semaphore_mem>>
    %9 = tpu.memref_squeeze %8 : memref<1x!tpu.dma_semaphore, #tpu.memory_space<semaphore_mem>> -> memref<!tpu.dma_semaphore, #tpu.memory_space<semaphore_mem>>
    tpu.enqueue_dma source(%6 : memref<720x512xbf16, #tpu.memory_space<any>>) target(%7 : memref<720x512xbf16, #tpu.memory_space<vmem>>) target_semaphore(%9 : memref<!tpu.dma_semaphore, #tpu.memory_space<semaphore_mem>>)
    %c0 = arith.constant 0 : index
    %c0_7 = arith.constant 0 : index
    %10 = vector.load %arg1[%c0, %c0_7] : memref<2x27xf32, #tpu.memory_space<vmem>>, vector<2x27xf32>
    %c0_8 = arith.constant 0 : index
    %c0_9 = arith.constant 0 : index
    %11 = vector.load %arg2[%c0_8, %c0_9] : memref<128x128xf32, #tpu.memory_space<vmem>>, vector<27x27xf32>
    %cst = arith.constant dense<0.000000e+00> : vector<2x27xf32>
    %12 = tpu.matmul %10, %11, %cst {dimension_numbers = #tpu.dot_dimension_numbers<[1], [0], [0], [1], [0, 0, 1, 1], [], []>} : vector<2x27xf32>, vector<27x27xf32>, vector<2x27xf32> -> vector<2x27xf32>
    %c120 = arith.constant 120 : index
    %c0_10 = arith.constant 0 : index
    %13 = vector.load %arg2[%c120, %c0_10] : memref<128x128xf32, #tpu.memory_space<vmem>>, vector<1x27xf32>
    %14 = vector.broadcast %13 : vector<1x27xf32> to vector<2x27xf32>
    %15 = arith.addf %12, %14 : vector<2x27xf32>
    %cst_11 = arith.constant 0.000000e+00 : f32
    %16 = vector.broadcast %cst_11 : f32 to vector<2x27xf32>
    %17 = arith.maximumf %15, %16 : vector<2x27xf32>
    %c0_12 = arith.constant 0 : index
    %c32 = arith.constant 32 : index
    %18 = vector.load %arg2[%c0_12, %c32] : memref<128x128xf32, #tpu.memory_space<vmem>>, vector<27x20xf32>
    %cst_13 = arith.constant dense<0.000000e+00> : vector<2x20xf32>
    %19 = tpu.matmul %17, %18, %cst_13 {dimension_numbers = #tpu.dot_dimension_numbers<[1], [0], [0], [1], [0, 0, 1, 1], [], []>} : vector<2x27xf32>, vector<27x20xf32>, vector<2x20xf32> -> vector<2x20xf32>
    %c121 = arith.constant 121 : index
    %c0_14 = arith.constant 0 : index
    %20 = vector.load %arg2[%c121, %c0_14] : memref<128x128xf32, #tpu.memory_space<vmem>>, vector<1x20xf32>
    %21 = vector.broadcast %20 : vector<1x20xf32> to vector<2x20xf32>
    %22 = arith.addf %19, %21 : vector<2x20xf32>
    %cst_15 = arith.constant 0.000000e+00 : f32
    %23 = vector.broadcast %cst_15 : f32 to vector<2x20xf32>
    %24 = arith.maximumf %22, %23 : vector<2x20xf32>
    %c0_16 = arith.constant 0 : index
    %c64 = arith.constant 64 : index
    %25 = vector.load %arg2[%c0_16, %c64] : memref<128x128xf32, #tpu.memory_space<vmem>>, vector<20x12xf32>
    %cst_17 = arith.constant dense<0.000000e+00> : vector<2x12xf32>
    %26 = tpu.matmul %24, %25, %cst_17 {dimension_numbers = #tpu.dot_dimension_numbers<[1], [0], [0], [1], [0, 0, 1, 1], [], []>} : vector<2x20xf32>, vector<20x12xf32>, vector<2x12xf32> -> vector<2x12xf32>
    %c122 = arith.constant 122 : index
    %c0_18 = arith.constant 0 : index
    %27 = vector.load %arg2[%c122, %c0_18] : memref<128x128xf32, #tpu.memory_space<vmem>>, vector<1x12xf32>
    %28 = vector.broadcast %27 : vector<1x12xf32> to vector<2x12xf32>
    %29 = arith.addf %26, %28 : vector<2x12xf32>
    %cst_19 = arith.constant 0.000000e+00 : f32
    %30 = vector.broadcast %cst_19 : f32 to vector<2x12xf32>
    %31 = arith.maximumf %29, %30 : vector<2x12xf32>
    %c0_i32_20 = arith.constant 0 : i32
    %32 = tpu.memref_slice %arg8[%c0_i32_20] : memref<3x!tpu.dma_semaphore, #tpu.memory_space<semaphore_mem>> -> memref<1x!tpu.dma_semaphore, #tpu.memory_space<semaphore_mem>>
    %33 = tpu.memref_squeeze %32 : memref<1x!tpu.dma_semaphore, #tpu.memory_space<semaphore_mem>> -> memref<!tpu.dma_semaphore, #tpu.memory_space<semaphore_mem>>
    tpu.wait_dma2 semaphore(%33 : memref<!tpu.dma_semaphore, #tpu.memory_space<semaphore_mem>>) src(%arg3 : memref<48x2304xbf16, #tpu.memory_space<any>>) dst(%arg6 : memref<48x2304xbf16, #tpu.memory_space<vmem>>)
    %c0_21 = arith.constant 0 : index
    %c0_22 = arith.constant 0 : index
    %34 = vector.load %arg0[%c0_21, %c0_22] : memref<2x32xf32, #tpu.memory_space<vmem>>, vector<2x32xf32>
    %35 = arith.truncf %34 : vector<2x32xf32> to vector<2x32xbf16>
    %c0_23 = arith.constant 0 : index
    %c0_24 = arith.constant 0 : index
    %36 = vector.load %arg6[%c0_23, %c0_24] : memref<48x2304xbf16, #tpu.memory_space<vmem>>, vector<32x2304xbf16>
    %c32_25 = arith.constant 32 : index
    %c0_26 = arith.constant 0 : index
    %37 = vector.load %arg6[%c32_25, %c0_26] : memref<48x2304xbf16, #tpu.memory_space<vmem>>, vector<1x2304xbf16>
    %38 = arith.extf %37 : vector<1x2304xbf16> to vector<1x2304xf32>
    %cst_27 = arith.constant dense<0.000000e+00> : vector<2x2304xf32>
    %39 = tpu.matmul %35, %36, %cst_27 {dimension_numbers = #tpu.dot_dimension_numbers<[1], [0], [0], [1], [0, 0, 1, 1], [], []>} : vector<2x32xbf16>, vector<32x2304xbf16>, vector<2x2304xf32> -> vector<2x2304xf32>
    %40 = vector.broadcast %38 : vector<1x2304xf32> to vector<2x2304xf32>
    %41 = arith.addf %39, %40 : vector<2x2304xf32>
    %42 = vector.extract_strided_slice %41 {offsets = [0, 0], sizes = [2, 1152], strides = [1, 1]} : vector<2x2304xf32> to vector<2x1152xf32>
    %43 = vector.extract_strided_slice %41 {offsets = [0, 1152], sizes = [2, 1152], strides = [1, 1]} : vector<2x2304xf32> to vector<2x1152xf32>
    %44 = arith.maximumf %42, %43 : vector<2x1152xf32>
    %c1_i32_28 = arith.constant 1 : i32
    %c0_i32_29 = arith.constant 0 : i32
    %c0_i32_30 = arith.constant 0 : i32
    %45 = tpu.memref_slice %arg4[%c0_i32_29, %c0_i32_30] : memref<1232x512xbf16, #tpu.memory_space<any>> -> memref<512x512xbf16, #tpu.memory_space<any>>
    %c0_i32_31 = arith.constant 0 : i32
    %c0_i32_32 = arith.constant 0 : i32
    %46 = tpu.memref_slice %arg7[%c0_i32_31, %c0_i32_32] : memref<1232x512xbf16, #tpu.memory_space<vmem>> -> memref<512x512xbf16, #tpu.memory_space<vmem>>
    %47 = tpu.memref_slice %arg8[%c1_i32_28] : memref<3x!tpu.dma_semaphore, #tpu.memory_space<semaphore_mem>> -> memref<1x!tpu.dma_semaphore, #tpu.memory_space<semaphore_mem>>
    %48 = tpu.memref_squeeze %47 : memref<1x!tpu.dma_semaphore, #tpu.memory_space<semaphore_mem>> -> memref<!tpu.dma_semaphore, #tpu.memory_space<semaphore_mem>>
    tpu.wait_dma2 semaphore(%48 : memref<!tpu.dma_semaphore, #tpu.memory_space<semaphore_mem>>) src(%45 : memref<512x512xbf16, #tpu.memory_space<any>>) dst(%46 : memref<512x512xbf16, #tpu.memory_space<vmem>>)
    %49 = vector.extract_strided_slice %44 {offsets = [0, 0], sizes = [2, 512], strides = [1, 1]} : vector<2x1152xf32> to vector<2x512xf32>
    %50 = arith.truncf %49 : vector<2x512xf32> to vector<2x512xbf16>
    %c0_33 = arith.constant 0 : index
    %c0_34 = arith.constant 0 : index
    %51 = vector.load %arg7[%c0_33, %c0_34] : memref<1232x512xbf16, #tpu.memory_space<vmem>>, vector<512x512xbf16>
    %cst_35 = arith.constant dense<0.000000e+00> : vector<2x512xf32>
    %52 = tpu.matmul %50, %51, %cst_35 {dimension_numbers = #tpu.dot_dimension_numbers<[1], [0], [0], [1], [0, 0, 1, 1], [], []>} : vector<2x512xbf16>, vector<512x512xbf16>, vector<2x512xf32> -> vector<2x512xf32>
    %c2_i32_36 = arith.constant 2 : i32
    %c512_i32_37 = arith.constant 512 : i32
    %c0_i32_38 = arith.constant 0 : i32
    %53 = tpu.memref_slice %arg4[%c512_i32_37, %c0_i32_38] : memref<1232x512xbf16, #tpu.memory_space<any>> -> memref<720x512xbf16, #tpu.memory_space<any>>
    %c512_i32_39 = arith.constant 512 : i32
    %c0_i32_40 = arith.constant 0 : i32
    %54 = tpu.memref_slice %arg7[%c512_i32_39, %c0_i32_40] : memref<1232x512xbf16, #tpu.memory_space<vmem>> -> memref<720x512xbf16, #tpu.memory_space<vmem>>
    %55 = tpu.memref_slice %arg8[%c2_i32_36] : memref<3x!tpu.dma_semaphore, #tpu.memory_space<semaphore_mem>> -> memref<1x!tpu.dma_semaphore, #tpu.memory_space<semaphore_mem>>
    %56 = tpu.memref_squeeze %55 : memref<1x!tpu.dma_semaphore, #tpu.memory_space<semaphore_mem>> -> memref<!tpu.dma_semaphore, #tpu.memory_space<semaphore_mem>>
    tpu.wait_dma2 semaphore(%56 : memref<!tpu.dma_semaphore, #tpu.memory_space<semaphore_mem>>) src(%53 : memref<720x512xbf16, #tpu.memory_space<any>>) dst(%54 : memref<720x512xbf16, #tpu.memory_space<vmem>>)
    %57 = vector.extract_strided_slice %44 {offsets = [0, 512], sizes = [2, 640], strides = [1, 1]} : vector<2x1152xf32> to vector<2x640xf32>
    %58 = arith.truncf %57 : vector<2x640xf32> to vector<2x640xbf16>
    %c512 = arith.constant 512 : index
    %c0_41 = arith.constant 0 : index
    %59 = vector.load %arg7[%c512, %c0_41] : memref<1232x512xbf16, #tpu.memory_space<vmem>>, vector<640x512xbf16>
    %cst_42 = arith.constant dense<0.000000e+00> : vector<2x512xf32>
    %60 = tpu.matmul %58, %59, %cst_42 {dimension_numbers = #tpu.dot_dimension_numbers<[1], [0], [0], [1], [0, 0, 1, 1], [], []>} : vector<2x640xbf16>, vector<640x512xbf16>, vector<2x512xf32> -> vector<2x512xf32>
    %61 = arith.addf %52, %60 : vector<2x512xf32>
    %c1152 = arith.constant 1152 : index
    %c0_43 = arith.constant 0 : index
    %62 = vector.load %arg7[%c1152, %c0_43] : memref<1232x512xbf16, #tpu.memory_space<vmem>>, vector<1x512xbf16>
    %63 = arith.extf %62 : vector<1x512xbf16> to vector<1x512xf32>
    %64 = vector.broadcast %63 : vector<1x512xf32> to vector<2x512xf32>
    %65 = arith.addf %61, %64 : vector<2x512xf32>
    %cst_44 = arith.constant 0.000000e+00 : f32
    %66 = vector.broadcast %cst_44 : f32 to vector<2x512xf32>
    %67 = arith.maximumf %65, %66 : vector<2x512xf32>
    %c1168 = arith.constant 1168 : index
    %c0_45 = arith.constant 0 : index
    %68 = vector.load %arg7[%c1168, %c0_45] : memref<1232x512xbf16, #tpu.memory_space<vmem>>, vector<64x512xbf16>
    %69 = arith.truncf %67 : vector<2x512xf32> to vector<2x512xbf16>
    %cst_46 = arith.constant dense<0.000000e+00> : vector<2x64xf32>
    %70 = tpu.matmul %69, %68, %cst_46 {dimension_numbers = #tpu.dot_dimension_numbers<[1], [1], [0], [0], [0, 0, 1, 0], [], []>} : vector<2x512xbf16>, vector<64x512xbf16>, vector<2x64xf32> -> vector<2x64xf32>
    %c123 = arith.constant 123 : index
    %c0_47 = arith.constant 0 : index
    %71 = vector.load %arg2[%c123, %c0_47] : memref<128x128xf32, #tpu.memory_space<vmem>>, vector<1x64xf32>
    %72 = vector.broadcast %71 : vector<1x64xf32> to vector<2x64xf32>
    %73 = arith.addf %70, %72 : vector<2x64xf32>
    %cst_48 = arith.constant 0.000000e+00 : f32
    %74 = vector.broadcast %cst_48 : f32 to vector<2x64xf32>
    %75 = arith.maximumf %73, %74 : vector<2x64xf32>
    %c0_49 = arith.constant 0 : index
    %c80 = arith.constant 80 : index
    %76 = vector.load %arg2[%c0_49, %c80] : memref<128x128xf32, #tpu.memory_space<vmem>>, vector<12x40xf32>
    %cst_50 = arith.constant dense<0.000000e+00> : vector<2x40xf32>
    %77 = tpu.matmul %31, %76, %cst_50 {dimension_numbers = #tpu.dot_dimension_numbers<[1], [0], [0], [1], [0, 0, 1, 1], [], []>} : vector<2x12xf32>, vector<12x40xf32>, vector<2x40xf32> -> vector<2x40xf32>
    %c32_51 = arith.constant 32 : index
    %c0_52 = arith.constant 0 : index
    %78 = vector.load %arg2[%c32_51, %c0_52] : memref<128x128xf32, #tpu.memory_space<vmem>>, vector<64x40xf32>
    %cst_53 = arith.constant dense<0.000000e+00> : vector<2x40xf32>
    %79 = tpu.matmul %75, %78, %cst_53 {dimension_numbers = #tpu.dot_dimension_numbers<[1], [0], [0], [1], [0, 0, 1, 1], [], []>} : vector<2x64xf32>, vector<64x40xf32>, vector<2x40xf32> -> vector<2x40xf32>
    %80 = arith.addf %77, %79 : vector<2x40xf32>
    %c124 = arith.constant 124 : index
    %c0_54 = arith.constant 0 : index
    %81 = vector.load %arg2[%c124, %c0_54] : memref<128x128xf32, #tpu.memory_space<vmem>>, vector<1x40xf32>
    %82 = vector.broadcast %81 : vector<1x40xf32> to vector<2x40xf32>
    %83 = arith.addf %80, %82 : vector<2x40xf32>
    %cst_55 = arith.constant 0.000000e+00 : f32
    %84 = vector.broadcast %cst_55 : f32 to vector<2x40xf32>
    %85 = arith.maximumf %83, %84 : vector<2x40xf32>
    %c32_56 = arith.constant 32 : index
    %c48 = arith.constant 48 : index
    %86 = vector.load %arg2[%c32_56, %c48] : memref<128x128xf32, #tpu.memory_space<vmem>>, vector<40x20xf32>
    %cst_57 = arith.constant dense<0.000000e+00> : vector<2x20xf32>
    %87 = tpu.matmul %85, %86, %cst_57 {dimension_numbers = #tpu.dot_dimension_numbers<[1], [0], [0], [1], [0, 0, 1, 1], [], []>} : vector<2x40xf32>, vector<40x20xf32>, vector<2x20xf32> -> vector<2x20xf32>
    %c125 = arith.constant 125 : index
    %c0_58 = arith.constant 0 : index
    %88 = vector.load %arg2[%c125, %c0_58] : memref<128x128xf32, #tpu.memory_space<vmem>>, vector<1x20xf32>
    %89 = vector.broadcast %88 : vector<1x20xf32> to vector<2x20xf32>
    %90 = arith.addf %87, %89 : vector<2x20xf32>
    %cst_59 = arith.constant 0.000000e+00 : f32
    %91 = vector.broadcast %cst_59 : f32 to vector<2x20xf32>
    %92 = arith.maximumf %90, %91 : vector<2x20xf32>
    %c96 = arith.constant 96 : index
    %c0_60 = arith.constant 0 : index
    %93 = vector.load %arg2[%c96, %c0_60] : memref<128x128xf32, #tpu.memory_space<vmem>>, vector<20x128xf32>
    %cst_61 = arith.constant dense<0.000000e+00> : vector<2x128xf32>
    %94 = tpu.matmul %92, %93, %cst_61 {dimension_numbers = #tpu.dot_dimension_numbers<[1], [0], [0], [1], [0, 0, 1, 1], [], []>} : vector<2x20xf32>, vector<20x128xf32>, vector<2x128xf32> -> vector<2x128xf32>
    %c126 = arith.constant 126 : index
    %c0_62 = arith.constant 0 : index
    %95 = vector.load %arg2[%c126, %c0_62] : memref<128x128xf32, #tpu.memory_space<vmem>>, vector<1x128xf32>
    %96 = vector.broadcast %95 : vector<1x128xf32> to vector<2x128xf32>
    %97 = arith.addf %94, %96 : vector<2x128xf32>
    %cst_63 = arith.constant 0.000000e+00 : f32
    %98 = vector.broadcast %cst_63 : f32 to vector<2x128xf32>
    %99 = arith.maximumf %97, %98 : vector<2x128xf32>
    %c0_64 = arith.constant 0 : index
    %c0_65 = arith.constant 0 : index
    %100 = vector.load %arg5[%c0_64, %c0_65] : memref<2x128xf32, #tpu.memory_space<vmem>>, vector<2x128xf32>
    tpu.vector_store %arg5[%c0_64, %c0_65], %99 {strides = array<i32>} : memref<2x128xf32, #tpu.memory_space<vmem>>, vector<2x128xf32>,
    return
  }
}

</mosaic_0001>

<bundles_post_ra>
// kernel: tpu_custom_call.1
= control target key start
LH: loop header
LB: loop body
LE: loop exit
PB: predicated region body
PF: predicated region fallthrough
CT: control target
= control target key end

     0   :  { %10 = vsyncpa [#allocation6], 0  ;;  %s5595_s0 = inlined_call_operand.hbm [shape: f32[2,32], index: 0, kind: input, shape index: {}]   ;;  %s5596_s1 = inlined_call_operand.hbm [shape: f32[2,27], index: 1, kind: input, shape index: {}]   ;;  %s5597_s2 = inlined_call_operand.hbm [shape: f32[128,128], index: 2, kind: input, shape index: {}]   ;;  %s5598_s3 = inlined_call_operand.hbm [shape: bf16[48,2304], index: 3, kind: input, shape index: {}]   ;;  %s5599_s4 = inlined_call_operand.hbm [shape: bf16[1232,512], index: 4, kind: input, shape index: {}]   ;;  %s5600_s5 = inlined_call_operand.hbm [shape: f32[2,128], index: 5, kind: output, shape index: {}]  }
   0x1   :  { %11 = vsyncpa [#allocation9], 0 }
   0x2   :  { %12 = vsyncpa [#allocation7], 0  ;;  %s4823_s18 = smov [#allocation8]   ;;  %s4824_s20 = smov [#allocation5]  }
   0x3   :  { %s29_s19 = sshll.u32 %s4823_s18, 4  ;;  %s19_s21 = sshll.u32 %s4824_s20, 4  ;;  %s30_s19 = int_to_ptr.vmem [resolvable:$true] %s29_s19  ;;  %s20_s21 = int_to_ptr.vmem [resolvable:$true] %s19_s21 }
   0x4   :  { %s4676_s22 = scalar_lea.vmem %s30_s19, 32  ;;  %p4681_p1 = scmp.lt.s32.totalorder %s30_s19, %s30_s19 }
   0x5   :  { %p4677_p0 = scmp.ne.s32.totalorder %s30_s19, %s4676_s22  ;;  %p4682_p2 = scmp.lt.s32.totalorder %s4676_s22, %s4676_s22 }
   0x7   :  { %p4683_p3 = por %p4682_p2, %p4681_p1 }
   0x9   :  { %p4684_p4 = pnand %p4683_p3, %p4677_p0 }
   0xb   :  { %4687 = shalt.err (!%p4684_p4)
}
   0xc   :  { %32 = dma.hbm_to_vmem [thread:$0]  %s5596_s1, 32, %s30_s19, [#allocation9]  }
   0xd   :  { %s4696_s25 = scalar_lea.vmem %s20_s21, 32  ;;  %p4701_p6 = scmp.lt.s32.totalorder %s20_s21, %s20_s21 }
   0xe   :  { %p4697_p5 = scmp.ne.s32.totalorder %s20_s21, %s4696_s25  ;;  %p4702_p7 = scmp.lt.s32.totalorder %s4696_s25, %s4696_s25 }
  0x10   :  { %p4703_p8 = por %p4702_p7, %p4701_p6 }
  0x12   :  { %p4704_p9 = pnand %p4703_p8, %p4697_p5 }
  0x14   :  { %4707 = shalt.err (!%p4704_p9)
}
  0x15   :  { %22 = dma.hbm_to_vmem [thread:$0]  %s5595_s0, 32, %s20_s21, [#allocation6]  }
  0x16   :  { %s4825_s28 = smov [#allocation10]  }
  0x17   :  { %s38_s29 = sshll.u32 %s4825_s28, 4  ;;  %s39_s29 = int_to_ptr.vmem [resolvable:$true] %s38_s29 }
  0x18   :  { %s4716_s30 = scalar_lea.vmem %s39_s29, 2048  ;;  %p4721_p11 = scmp.lt.s32.totalorder %s39_s29, %s39_s29 }
  0x19   :  { %p4717_p10 = scmp.ne.s32.totalorder %s39_s29, %s4716_s30  ;;  %p4722_p12 = scmp.lt.s32.totalorder %s4716_s30, %s4716_s30 }
  0x1b   :  { %p4723_p13 = por %p4722_p12, %p4721_p11 }
  0x1d   :  { %p4724_p0 = pnand %p4723_p13, %p4717_p10 }
  0x1f   :  { %4727 = shalt.err (!%p4724_p0)
}
  0x20   :  { %s4826_s1 = smov 128   ;;  %s4827_s6 = smov 8  }
  0x21   :  { %44 = dma.hbm_to_vmem [thread:$0]  %s5597_s2, 2048, %s39_s29, [#allocation9], %s4826_s1, %s4826_s1, %s4827_s6  }
  0x22   :  { %4811 = dma.done.wait [#allocation6], 32  }
  0x23   :  { %4812 = vsyncadd [#allocation6], 4294967264 }
  0x24   :  { %4813 = dma.done.wait [#allocation9], 2080  }
  0x25   :  { %4814 = vsyncadd [#allocation9], 4294965216  ;;  %v5601_v0 = vmov 0.0   ;;  %vm4829_vm0 = vmmov 0   ;;  %vm106_vm1 = vcmask 1042432   ;;  %v95_v2 = vld [vmem:[#allocation10 + $0x10] sm:$0xff] }
  0x26   :  { %4255 = vmatprep.subr.mxu0 %v5601_v0  ;;  %4263 = vmatprep.mubr.msk.f32.mxu0 %vm4829_vm0, %v5601_v0  ;;  %v96_v1 = vld [vmem:[#allocation10 + $0x18] sm:$0x7]  ;;  %v94_v3 = vld [vmem:[#allocation10 + $0x8] sm:$0xff]  ;;  %s4830_s0 = smov 96   ;;  %v93_v4 = vld [vmem:[#allocation10] sm:$0xff]  ;;  %vm102_vm2 = vcmask 220160  }
  0x27   :  { %4266 = vmatprep.subr.mxu1 %v5601_v0  ;;  %4274 = vmatprep.mubr.msk.f32.mxu1 %vm4829_vm0, %v5601_v0  ;;  %v92_v5 = vld [vmem:[#allocation8] sm:$0x3]  ;;  %v278_v6 = vld [vmem:[#allocation10 + $0x10] sm:$0xf]  ;;  %s4831_s2 = smov 64   ;;  %vm299_vm3 = vcmask 1043456  }
  0x28   :  { %4256 = vmatpush3.msk.msra.mxu0 %vm106_vm1, %v96_v1  ;;  %195 = vrot.lane.b32.xlu0 %v96_v1, %s4830_s0  ;;  %v3848_v11 = vld [vmem:[#allocation10 + $0x78] ss:$0 sm:$0xff]  ;;  %v3851_v19 = vld [vmem:[#allocation10 + $0x79] ss:$0 sm:$0xff]  ;;  %vm295_vm4 = vcmask 162816   ;;  %s4832_s9 = smov [#allocation2]  }
  0x29   :  { %4257 = vmatprep.subr.mxu0 %v5601_v0  ;;  %191 = vrot.lane.b32.xlu1 %v94_v3, %s4830_s0  ;;  %s62_s10 = sshll.u32 %s4832_s9, 4  ;;  %s4833_s11 = smov [#allocation3]   ;;  %s63_s10 = int_to_ptr.vmem [resolvable:$true] %s62_s10 }
  0x2a   :  { %4258 = vmatpush3.msra.mxu0 %v95_v2  ;;  %s74_s12 = sshll.u32 %s4833_s11, 4  ;;  %s4736_s13 = scalar_lea.vmem %s63_s10, 6912  ;;  %s75_s12 = int_to_ptr.vmem [resolvable:$true] %s74_s12 }
  0x2b   :  { %4259 = vmatprep.subr.mxu0 %v5601_v0  ;;  %p4737_p1 = scmp.ne.s32.totalorder %s63_s10, %s4736_s13  ;;  %p4741_p2 = scmp.lt.s32.totalorder %s63_s10, %s63_s10 }
  0x2c   :  { %4260 = vmatpush3.msra.mxu0 %v94_v3  ;;  %193 = vrot.lane.b32.xlu0 %v95_v2, %s4830_s0  ;;  %p4742_p3 = scmp.lt.s32.totalorder %s4736_s13, %s4736_s13 }
  0x2d   :  { %4261 = vmatprep.subr.mxu0 %v5601_v0  ;;  %189 = vrot.lane.b32.xlu1 %v93_v4, %s4830_s0 }
  0x2e   :  { %4262 = vmatpush3.msra.mxu0 %v93_v4  ;;  %p4743_p4 = por %p4742_p3, %p4741_p2 }
  0x2f   :  { %4264 = vmatmul.mubr.msk.f32.vlgmr.msra.gmra.mxu0 %vm102_vm2, %v92_v5  ;;  %4277 = vmatprep.subr.mxu0 %v5601_v0 }
  0x30   :  { %4283 = vmatprep.mubr.msk.f32.mxu0 %vm4829_vm0, %v5601_v0  ;;  %291 = vrot.lane.b32.xlu0 %v278_v6, %s4831_s2  ;;  %p4744_p5 = pnand %p4743_p4, %p4737_p1 }
  0x31   :  { %289 = vrot.lane.b32.xlu1 %v94_v3, %s4831_s2 }
  0x34   :  { %287 = vrot.lane.b32.xlu0 %v93_v4, %s4831_s2 }
  0x9a   :  { %v196_v7 = vpop.permute.xlu0 %195 }
  0x9b   :  { %4267 = vmatpush3.msk.msra.mxu1 %vm106_vm1, %v196_v7  ;;  %v192_v8 = vpop.permute.xlu1 %191 }
  0x9c   :  { %4268 = vmatprep.subr.mxu1 %v5601_v0 }
  0x9e   :  { %v194_v9 = vpop.permute.xlu0 %193 }
  0x9f   :  { %4269 = vmatpush3.msra.mxu1 %v194_v9  ;;  %v190_v10 = vpop.permute.xlu1 %189 }
  0xa0   :  { %4270 = vmatprep.subr.mxu1 %v5601_v0 }
  0xa1   :  { %4271 = vmatpush3.msra.mxu1 %v192_v8 }
  0xa2   :  { %4272 = vmatprep.subr.mxu1 %v5601_v0  ;;  %v292_v16 = vpop.permute.xlu0 %291 }
  0xa3   :  { %4273 = vmatpush3.msra.mxu1 %v190_v10  ;;  %4278 = vmatpush3.msk.msra.mxu0 %vm299_vm3, %v292_v16  ;;  %v290_v17 = vpop.permute.xlu1 %289 }
  0xa4   :  { %4279 = vmatprep.subr.mxu0 %v5601_v0 }
  0xa5   :  { %4280 = vmatpush3.msra.mxu0 %v290_v17 }
  0xa6   :  { %v288_v18 = vpop.permute.xlu0 %287  ;;  %4281 = vmatprep.subr.mxu0 %v5601_v0 }
  0xa7   :  { %4282 = vmatpush3.msra.mxu0 %v288_v18 }
  0xef   :  { %v176_v12 = vpop.f32.mrf.mxu0 }
  0xf0   :  { %v177_v13 = vadd.f32 %v3848_v11, %v176_v12 }
  0xf1   :  { %v4265_v14 = vpop.f32.mrf.mxu0 }
  0xf2   :  { %v180_v15 = vmax.f32 %v177_v13, 0.0 }
  0xf4   :  { %4275 = vmatmul.mubr.msk.f32.vlgmr.msra.gmra.mxu1 %vm102_vm2, %v180_v15 }
 0x1b4   :  { %v271_v20 = vpop.f32.mrf.mxu1 }
 0x1b5   :  { %v272_v21 = vadd.f32 %v3851_v19, %v271_v20 }
 0x1b6   :  { %v4276_v22 = vpop.f32.mrf.mxu1 }
 0x1b7   :  { %v275_v23 = vmax.f32 %v272_v21, 0.0 }
 0x1b9   :  { %4284 = vmatmul.mubr.msk.f32.vlgmr.msra.gmra.mxu0 %vm295_vm4, %v275_v23 }
 0x1ba   :  { %4747 = shalt.err (!%p4744_p5)  }
 0x1bb   :  { %65 = dma.hbm_to_vmem [thread:$0]  %s5598_s3, 6912, %s63_s10, [#allocation4] }
 0x1bc   :  { %s4756_s16 = scalar_lea.vmem %s75_s12, 16384  ;;  %s4760_s17 = scalar_lea.vmem %s75_s12, 39424 }
 0x1bd   :  { %p4757_p6 = scmp.ne.s32.totalorder %s75_s12, %s4756_s16  ;;  %p4761_p7 = scmp.lt.s32.totalorder %s75_s12, %s75_s12 }
 0x1be   :  { %p4762_p8 = scmp.lt.s32.totalorder %s4760_s17, %s4756_s16 }
 0x1c0   :  { %p4763_p9 = por %p4762_p8, %p4761_p7 }
 0x1c2   :  { %p4764_p10 = pnand %p4763_p9, %p4757_p6 }
 0x1c4   :  { %4767 = shalt.err (!%p4764_p10)  }
 0x1c5   :  { %77 = dma.hbm_to_vmem [thread:$0]  %s5599_s4, 16384, %s75_s12, [#allocation4 + $0x1] }
 0x1c6   :  { %s78_s22 = scalar_lea.hbm %s5599_s4, 16384  ;;  %s4834_s23 = smov [#allocation3 + $0x400]  }
 0x1c7   :  { %s88_s24 = sshll.u32 %s4834_s23, 4  ;;  %s89_s24 = int_to_ptr.vmem [resolvable:$true] %s88_s24 }
 0x1c8   :  { %s4778_s3 = scalar_lea.vmem %s89_s24, 23040  ;;  %p4783_p12 = scmp.lt.s32.totalorder %s89_s24, %s75_s12 }
 0x1c9   :  { %p4779_p11 = scmp.ne.s32.totalorder %s89_s24, %s4778_s3  ;;  %p4784_p13 = scmp.lt.s32.totalorder %s4760_s17, %s4778_s3 }
 0x1cb   :  { %p4785_p0 = por %p4784_p13, %p4783_p12 }
 0x1cd   :  { %p4786_p1 = pnand %p4785_p0, %p4779_p11 }
 0x1cf   :  { %4789 = shalt.err (!%p4786_p1)  }
 0x1d0   :  { %91 = dma.hbm_to_vmem [thread:$0]  %s78_s22, 23040, %s89_s24, [#allocation4 + $0x2]  ;;  %v3854_v24 = vld [vmem:[#allocation10 + $0x7a] ss:$0 sm:$0xff] }
 0x279   :  { %v368_v25 = vpop.f32.mrf.mxu0 }
 0x27a   :  { %v4910_v26 = vadd.f32 %v3854_v24, %v368_v25 }
 0x27b   :  { %v4285_v27 = vpop.f32.mrf.mxu0 }
 0x27c   :  { %5697 = vst [vmem:[#allocation26_spill] sm:$0xff] %v4910_v26 }
 0x27d   :  { %4815 = dma.done.wait [#allocation4], 6912 }
 0x27e   :  { %4816 = vsyncadd [#allocation4], 4294960384  ;;  %v5603_v29 = vmov 0   ;;  %v4350_v30 = vld [vmem:[#allocation2 + $0x94] ss:$72 sps:$4 sm:$0xff]   ;;  %vm694_vm5 = vcmask 261120   ;;  %v442_v7 = vlaneseq }
 0x27f   :  { %730 = vmatprep.mubr.bf16.mxu1 %v5603_v29  ;;  %771 = vmatprep.mubr.bf16.mxu0 %v5603_v29  ;;  %v4352_v31 = vld [vmem:[#allocation2 + $0x9c] ss:$72 sps:$4 sm:$0xff]   ;;  %v4354_v32 = vld [vmem:[#allocation2 + $0x90] ss:$72 sps:$4 sm:$0xff]   ;;  %v4358_v35 = vld [vmem:[#allocation2 + $0xc] ss:$72 sps:$4 sm:$0xff]  }
 0x280   :  { %710 = vmatprep.subr.bf16.mxu1 %v4350_v30  ;;  %v4355_v33 = vld [vmem:[#allocation2 + $0x98] ss:$72 sps:$4 sm:$0xff]   ;;  %751 = vmatprep.subr.bf16.mxu0 %v4352_v31  ;;  %v4356_v34 = vld [vmem:[#allocation2 + $0x4] ss:$72 sps:$4 sm:$0xff]   ;;  %v4361_v37 = vld [vmem:[#allocation2 + $0x8] ss:$72 sps:$4 sm:$0xff]  }
 0x281   :  { %711 = vmatpush1.bf16.msra.mxu1 %v4354_v32  ;;  %752 = vmatpush1.bf16.msra.mxu0 %v4355_v33  ;;  %v4360_v36 = vld [vmem:[#allocation2] ss:$72 sps:$4 sm:$0xff]   ;;  %v377_v38 = vld [vmem:[#allocation5] sm:$0x3]  ;;  %v4364_v40 = vld [vmem:[#allocation2 + $0xa4] ss:$72 sps:$4 sm:$0xff]  }
 0x282   :  { %712 = vmatprep.subr.bf16.mxu1 %v4356_v34  ;;  %753 = vmatprep.subr.bf16.mxu0 %v4358_v35  ;;  %v4362_v39 = vld [vmem:[#allocation2 + $0xa0] ss:$72 sps:$4 sm:$0xff]   ;;  %v4915_v41 = vpack.c.bf16 %v377_v38, %v377_v38  ;;  %v4367_v43 = vld [vmem:[#allocation2 + $0xac] ss:$72 sps:$4 sm:$0xff]   ;;  %v4373_v45 = vld [vmem:[#allocation2 + $0x1c] ss:$72 sps:$4 sm:$0xff]  }
 0x283   :  { %v4365_v42 = vld [vmem:[#allocation2 + $0xa8] ss:$72 sps:$4 sm:$0xff]   ;;  %v4370_v44 = vld [vmem:[#allocation2 + $0x14] ss:$72 sps:$4 sm:$0xff]   ;;  %v4371_v47 = vld [vmem:[#allocation2 + $0x18] ss:$72 sps:$4 sm:$0xff]  }
 0x284   :  { %v4368_v46 = vld [vmem:[#allocation2 + $0x10] ss:$72 sps:$4 sm:$0xff]   ;;  %v4376_v48 = vld [vmem:[#allocation2 + $0xb4] ss:$72 sps:$4 sm:$0xff]   ;;  %v4382_v52 = vld [vmem:[#allocation2 + $0x24] ss:$72 sps:$4 sm:$0xff]  }
 0x285   :  { %713 = vmatpush1.bf16.msra.mxu1 %v4360_v36  ;;  %754 = vmatpush1.bf16.msra.mxu0 %v4361_v37  ;;  %v4379_v49 = vld [vmem:[#allocation2 + $0xbc] ss:$72 sps:$4 sm:$0xff]   ;;  %v4374_v50 = vld [vmem:[#allocation2 + $0xb0] ss:$72 sps:$4 sm:$0xff]   ;;  %v4385_v53 = vld [vmem:[#allocation2 + $0x2c] ss:$72 sps:$4 sm:$0xff]  }
 0x286   :  { %792 = vmatprep.subr.bf16.mxu1 %v4364_v40  ;;  %833 = vmatprep.subr.bf16.mxu0 %v4367_v43  ;;  %v4377_v51 = vld [vmem:[#allocation2 + $0xb8] ss:$72 sps:$4 sm:$0xff]   ;;  %v4383_v55 = vld [vmem:[#allocation2 + $0x28] ss:$72 sps:$4 sm:$0xff]   ;;  %v4388_v56 = vld [vmem:[#allocation2 + $0xc4] ss:$72 sps:$4 sm:$0xff]  }
 0x287   :  { %v4380_v54 = vld [vmem:[#allocation2 + $0x20] ss:$72 sps:$4 sm:$0xff]   ;;  %v4391_v57 = vld [vmem:[#allocation2 + $0xcc] ss:$72 sps:$4 sm:$0xff]   ;;  %v4397_v61 = vld [vmem:[#allocation2 + $0x3c] ss:$72 sps:$4 sm:$0xff]  }
 0x288   :  { %3893 = vmatmul.mubr.msk.bf16.vlgmr.msra.gmra.mxu1 %vm694_vm5, %v4915_v41  ;;  %3894 = vmatmul.mubr.msk.bf16.vlgmr.msra.gmra.mxu0 %vm694_vm5, %v4915_v41  ;;  %v4386_v58 = vld [vmem:[#allocation2 + $0xc0] ss:$72 sps:$4 sm:$0xff]   ;;  %v4394_v60 = vld [vmem:[#allocation2 + $0x34] ss:$72 sps:$4 sm:$0xff]   ;;  %v4392_v62 = vld [vmem:[#allocation2 + $0x30] ss:$72 sps:$4 sm:$0xff]  }
 0x289   :  { %793 = vmatpush1.bf16.msra.mxu1 %v4362_v39  ;;  %834 = vmatpush1.bf16.msra.mxu0 %v4365_v42  ;;  %v4389_v59 = vld [vmem:[#allocation2 + $0xc8] ss:$72 sps:$4 sm:$0xff]   ;;  %v4395_v63 = vld [vmem:[#allocation2 + $0x38] ss:$72 sps:$4 sm:$0xff]   ;;  %v4400_v1 = vld [vmem:[#allocation2 + $0xd4] ss:$72 sps:$4 sm:$0xff]  }
 0x28a   :  { %794 = vmatprep.subr.bf16.mxu1 %v4370_v44  ;;  %835 = vmatprep.subr.bf16.mxu0 %v4373_v45  ;;  %v4398_v2 = vld [vmem:[#allocation2 + $0xd0] ss:$72 sps:$4 sm:$0xff]   ;;  %v4403_v3 = vld [vmem:[#allocation2 + $0x44] ss:$72 sps:$4 sm:$0xff]   ;;  %v4401_v4 = vld [vmem:[#allocation2 + $0x40] ss:$72 sps:$4 sm:$0xff]  }
 0x28b   :  { %812 = vmatprep.mubr.bf16.mxu1 %v5603_v29  ;;  %853 = vmatprep.mubr.bf16.mxu0 %v5603_v29  ;;  %v443_v12 = vshrl.u32 %v442_v7, 7  ;;  %v420_v15 = vld [vmem:[#allocation2 + $0x148] sm:$0x11]  ;;  %v415_v16 = vld [vmem:[#allocation2 + $0x120] sm:$0x11] }
 0x28c   :  { %v416_v17 = vld [vmem:[#allocation2 + $0x128] sm:$0x11]  ;;  %v425_v20 = vunpack.c.h.bf16 %v415_v16  ;;  %v434_v21 = vunpack.c.l.bf16 %v420_v15  ;;  %v424_v22 = vunpack.c.l.bf16 %v415_v16  ;;  %v4952_v27 = vld [vmem:[#allocation2 + $0x140] sm:$0x11]  ;;  %v435_v32 = vunpack.c.h.bf16 %v420_v15  ;;  %v417_v36 = vld [vmem:[#allocation2 + $0x130] sm:$0x11] }
 0x28d   :  { %795 = vmatpush1.bf16.msra.mxu1 %v4368_v46  ;;  %836 = vmatpush1.bf16.msra.mxu0 %v4371_v47  ;;  %v4948_v23 = vsub.s32 0, %v443_v12  ;;  %v426_v30 = vunpack.c.l.bf16 %v416_v17  ;;  %v433_v31 = vunpack.c.h.bf16 %v4952_v27  ;;  %v422_v42 = vld [vmem:[#allocation2 + $0x158] sm:$0x11]  ;;  %v427_v47 = vunpack.c.h.bf16 %v416_v17 }
 0x28e   :  { %874 = vmatprep.subr.bf16.mxu1 %v4376_v48  ;;  %915 = vmatprep.subr.bf16.mxu0 %v4379_v49  ;;  %v418_v44 = vld [vmem:[#allocation2 + $0x138] sm:$0x11]  ;;  %v428_v48 = vunpack.c.l.bf16 %v417_v36  ;;  %v429_v49 = vunpack.c.h.bf16 %v417_v36 }
 0x28f   :  { %5698 = vst [vmem:[#allocation27_spill] sm:$0xff] %v4948_v23  ;;  %v449_v35 = vrot.slane %v425_v20, %v4948_v23  ;;  %v485_v37 = vrot.slane %v434_v21, %v4948_v23  ;;  %v445_v38 = vrot.slane %v424_v22, %v4948_v23  ;;  %v453_v43 = vrot.slane %v426_v30, %v4948_v23 }
 0x290   :  { %3895 = vmatmul.mubr.msk.bf16.vlgmr.msra.gmra.mxu1 %vm694_vm5, %v4915_v41  ;;  %3896 = vmatmul.mubr.msk.bf16.vlgmr.msra.gmra.mxu0 %vm694_vm5, %v4915_v41  ;;  %v481_v45 = vrot.slane %v433_v31, %v4948_v23  ;;  %v489_v46 = vrot.slane %v435_v32, %v4948_v23  ;;  %v431_v21 = vunpack.c.h.bf16 %v418_v44 }
 0x291   :  { %875 = vmatpush1.bf16.msra.mxu1 %v4374_v50  ;;  %916 = vmatpush1.bf16.msra.mxu0 %v4377_v51 }
 0x292   :  { %876 = vmatprep.subr.bf16.mxu1 %v4382_v52  ;;  %917 = vmatprep.subr.bf16.mxu0 %v4385_v53 }
 0x293   :  { %894 = vmatprep.mubr.bf16.mxu1 %v5603_v29  ;;  %935 = vmatprep.mubr.bf16.mxu0 %v5603_v29 }
 0x295   :  { %877 = vmatpush1.bf16.msra.mxu1 %v4380_v54  ;;  %918 = vmatpush1.bf16.msra.mxu0 %v4383_v55  ;;  %v438_v55 = vunpack.c.l.bf16 %v422_v42 }
 0x296   :  { %956 = vmatprep.subr.bf16.mxu1 %v4388_v56  ;;  %997 = vmatprep.subr.bf16.mxu0 %v4391_v57  ;;  %v430_v57 = vunpack.c.l.bf16 %v418_v44 }
 0x298   :  { %3897 = vmatmul.mubr.msk.bf16.vlgmr.msra.gmra.mxu1 %vm694_vm5, %v4915_v41  ;;  %3898 = vmatmul.mubr.msk.bf16.vlgmr.msra.gmra.mxu0 %vm694_vm5, %v4915_v41 }
 0x299   :  { %957 = vmatpush1.bf16.msra.mxu1 %v4386_v58  ;;  %998 = vmatpush1.bf16.msra.mxu0 %v4389_v59 }
 0x29a   :  { %958 = vmatprep.subr.bf16.mxu1 %v4394_v60  ;;  %999 = vmatprep.subr.bf16.mxu0 %v4397_v61  ;;  %v439_v61 = vunpack.c.h.bf16 %v422_v42 }
 0x29b   :  { %976 = vmatprep.mubr.bf16.mxu1 %v5603_v29  ;;  %1017 = vmatprep.mubr.bf16.mxu0 %v5603_v29 }
 0x29c   :  { %v505_v20 = vrot.slane %v439_v61, %v4948_v23 }
 0x29d   :  { %959 = vmatpush1.bf16.msra.mxu1 %v4392_v62  ;;  %1000 = vmatpush1.bf16.msra.mxu0 %v4395_v63 }
 0x29e   :  { %1038 = vmatprep.subr.bf16.mxu1 %v4400_v1 }
 0x2a0   :  { %3899 = vmatmul.mubr.msk.bf16.vlgmr.msra.gmra.mxu1 %vm694_vm5, %v4915_v41  ;;  %3900 = vmatmul.mubr.msk.bf16.vlgmr.msra.gmra.mxu0 %vm694_vm5, %v4915_v41 }
 0x2a1   :  { %1039 = vmatpush1.bf16.msra.mxu1 %v4398_v2  ;;  %1058 = vmatprep.mubr.bf16.mxu1 %v5603_v29 }
 0x2a2   :  { %1040 = vmatprep.subr.bf16.mxu1 %v4403_v3  ;;  %v457_v3 = vrot.slane %v427_v47, %v4948_v23 }
 0x2a5   :  { %1041 = vmatpush1.bf16.msra.mxu1 %v4401_v4  ;;  %v465_v4 = vrot.slane %v429_v49, %v4948_v23 }
 0x2a8   :  { %3901 = vmatmul.mubr.msk.bf16.vlgmr.msra.gmra.mxu1 %vm694_vm5, %v4915_v41  ;;  %v421_v41 = vld [vmem:[#allocation2 + $0x150] sm:$0x11] }
 0x2a9   :  { %v436_v54 = vunpack.c.l.bf16 %v421_v41  ;;  %v437_v60 = vunpack.c.h.bf16 %v421_v41 }
 0x2ab   :  { %v493_v12 = vrot.slane %v436_v54, %v4948_v23  ;;  %v497_v17 = vrot.slane %v437_v60, %v4948_v23 }
 0x348   :  { %v732_v5 = vpop.f32.mrf.mxu1  ;;  %v773_v6 = vpop.f32.mrf.mxu0 }
 0x349   :  { %v733_v56 = vadd.f32 %v732_v5, %v445_v38  ;;  %v774_v62 = vadd.f32 %v773_v6, %v453_v43  ;;  %v501_v5 = vrot.slane %v438_v55, %v4948_v23  ;;  %v469_v6 = vrot.slane %v430_v57, %v4948_v23 }
 0x34a   :  { %v734_v8 = vpop.f32.mrf.mxu1  ;;  %v4942_v9 = vpop.f32.mrf.mxu0  ;;  %v432_v38 = vunpack.c.l.bf16 %v4952_v27 }
 0x34b   :  { %v735_v52 = vadd.f32 %v734_v8, %v449_v35  ;;  %v776_v32 = vadd.f32 %v4942_v9, %v457_v3  ;;  %v473_v9 = vrot.slane %v431_v21, %v4948_v23 }
 0x34c   :  { %v736_v10 = vpop.f32.mrf.mxu1  ;;  %v777_v11 = vpop.f32.mrf.mxu0  ;;  %v477_v49 = vrot.slane %v432_v38, %v4948_v23 }
 0x34e   :  { %v737_v13 = vpop.f32.mrf.mxu1  ;;  %v778_v14 = vpop.f32.mrf.mxu0 }
 0x34f   :  { %v423_v13 = vld [vmem:[#allocation2 + $0x160] sm:$0x11]  ;;  %v461_v14 = vrot.slane %v428_v48, %v4948_v23 }
 0x350   :  { %v4944_v18 = vpop.f32.mrf.mxu1  ;;  %v4946_v19 = vpop.f32.mrf.mxu0  ;;  %v440_v31 = vunpack.c.l.bf16 %v423_v13  ;;  %v441_v41 = vunpack.c.h.bf16 %v423_v13 }
 0x351   :  { %v815_v36 = vadd.f32 %v4944_v18, %v461_v14 }
 0x352   :  { %v816_v24 = vpop.f32.mrf.mxu1  ;;  %v4950_v25 = vpop.f32.mrf.mxu0  ;;  %v509_v18 = vrot.slane %v440_v31, %v4948_v23 }
 0x354   :  { %v818_v33 = vpop.f32.mrf.mxu1  ;;  %v859_v34 = vpop.f32.mrf.mxu0 }
 0x355   :  { %v817_v33 = vadd.f32 %v816_v24, %v465_v4 }
 0x356   :  { %v819_v39 = vpop.f32.mrf.mxu1  ;;  %v860_v40 = vpop.f32.mrf.mxu0 }
 0x358   :  { %v4961_v50 = vpop.f32.mrf.mxu1  ;;  %v937_v51 = vpop.f32.mrf.mxu0 }
 0x359   :  { %v938_v53 = vadd.f32 %v937_v51, %v485_v37  ;;  %v856_v37 = vadd.f32 %v4946_v19, %v469_v6  ;;  %v513_v51 = vrot.slane %v441_v41, %v4948_v23 }
 0x35a   :  { %v898_v58 = vpop.f32.mrf.mxu1  ;;  %v939_v59 = vpop.f32.mrf.mxu0 }
 0x35b   :  { %v1068_v63 = vmax.f32 %v735_v52, %v938_v53  ;;  %v899_v1 = vadd.f32 %v898_v58, %v481_v45  ;;  %v940_v2 = vadd.f32 %v939_v59, %v489_v46  ;;  %v858_v53 = vadd.f32 %v4950_v25, %v473_v9 }
 0x35c   :  { %v900_v7 = vpop.f32.mrf.mxu1  ;;  %v941_v10 = vpop.f32.mrf.mxu0 }
 0x35d   :  { %v1067_v8 = vmax.f32 %v733_v56, %v899_v1  ;;  %v1069_v11 = vmax.f32 %v774_v62, %v940_v2  ;;  %v897_v56 = vadd.f32 %v4961_v50, %v477_v49 }
 0x35e   :  { %v901_v15 = vpop.f32.mrf.mxu1  ;;  %v942_v16 = vpop.f32.mrf.mxu0 }
 0x360   :  { %v978_v22 = vpop.f32.mrf.mxu1  ;;  %v1019_v30 = vpop.f32.mrf.mxu0 }
 0x361   :  { %v979_v34 = vadd.f32 %v978_v22, %v493_v12  ;;  %v1020_v35 = vadd.f32 %v1019_v30, %v501_v5 }
 0x362   :  { %v980_v39 = vpop.f32.mrf.mxu1  ;;  %v1021_v40 = vpop.f32.mrf.mxu0 }
 0x363   :  { %v1070_v42 = vmax.f32 %v776_v32, %v979_v34  ;;  %v4975_v43 = vmax.f32 %v817_v33, %v1020_v35  ;;  %v981_v44 = vadd.f32 %v980_v39, %v497_v17  ;;  %v1022_v45 = vadd.f32 %v1021_v40, %v505_v20 }
 0x364   :  { %v982_v46 = vpop.f32.mrf.mxu1  ;;  %v1023_v47 = vpop.f32.mrf.mxu0 }
 0x365   :  { %v4978_v24 = vmax.f32 %v815_v36, %v981_v44  ;;  %v4980_v48 = vmax.f32 %v856_v37, %v1022_v45 }
 0x366   :  { %v983_v19 = vpop.f32.mrf.mxu1  ;;  %v1024_v27 = vpop.f32.mrf.mxu0 }
 0x368   :  { %v1060_v52 = vpop.f32.mrf.mxu1 }
 0x369   :  { %v1061_v54 = vadd.f32 %v1060_v52, %v509_v18 }
 0x36a   :  { %v1062_v55 = vpop.f32.mrf.mxu1 }
 0x36b   :  { %v4987_v57 = vmax.f32 %v858_v53, %v1061_v54  ;;  %v1063_v58 = vadd.f32 %v1062_v55, %v513_v51 }
 0x36c   :  { %v1064_v59 = vpop.f32.mrf.mxu1 }
 0x36d   :  { %v4989_v60 = vmax.f32 %v897_v56, %v1063_v58 }
 0x36e   :  { %v1065_v61 = vpop.f32.mrf.mxu1 }
 0x36f   :  { %4817 = dma.done.wait [#allocation4 + $0x1], 16384 }
 0x370   :  { %4818 = vsyncadd [#allocation4 + $0x1], 4294950912  ;;  %v4991_v62 = vpack.c.bf16 %v1067_v8, %v1067_v8  ;;  %v4993_v1 = vpack.c.bf16 %v1068_v63, %v1068_v63  ;;  %v4995_v2 = vpack.c.bf16 %v1069_v11, %v1069_v11  ;;  %v4997_v25 = vpack.c.bf16 %v1070_v42, %v1070_v42  ;;  %v4999_v3 = vld [vmem:[#allocation3] sm:$0xff]  ;;  %v5001_v50 = vld [vmem:[#allocation3 + $0x8] sm:$0xff] }
 0x371   :  { %5701 = vst [vmem:[#allocation30_spill] sm:$0xff] %v5001_v50  ;;  %v5003_v4 = vld [vmem:[#allocation3 + $0x10] sm:$0xff]  ;;  %v5005_v7 = vld [vmem:[#allocation3 + $0x18] sm:$0xff]  ;;  %v5007_v10 = vld [vmem:[#allocation3 + $0x20] sm:$0xff] }
 0x372   :  { %5699 = vst [vmem:[#allocation28_spill] sm:$0xff] %v4991_v62  ;;  %5700 = vst [vmem:[#allocation29_spill] sm:$0xff] %v4995_v2  ;;  %v5009_v12 = vld [vmem:[#allocation3 + $0x28] sm:$0xff]  ;;  %v5011_v8 = vld [vmem:[#allocation3 + $0x30] sm:$0xff] }
 0x373   :  { %5702 = vst [vmem:[#allocation31_spill] sm:$0xff] %v5005_v7  ;;  %5703 = vst [vmem:[#allocation32_spill] sm:$0xff] %v5009_v12  ;;  %v5013_v63 = vld [vmem:[#allocation3 + $0x38] sm:$0xff]  ;;  %v5015_v11 = vld [vmem:[#allocation3 + $0x40] sm:$0xff] }
 0x374   :  { %5704 = vst [vmem:[#allocation33_spill] sm:$0xff] %v5013_v63  ;;  %v5017_v5 = vld [vmem:[#allocation3 + $0x48] sm:$0xff]  ;;  %v5019_v13 = vld [vmem:[#allocation3 + $0x50] sm:$0xff]  ;;  %v5021_v14 = vld [vmem:[#allocation3 + $0x58] sm:$0xff] }
 0x375   :  { %5705 = vst [vmem:[#allocation34_spill] sm:$0xff] %v5017_v5  ;;  %5706 = vst [vmem:[#allocation35_spill] sm:$0xff] %v5021_v14  ;;  %v5023_v6 = vld [vmem:[#allocation3 + $0x60] sm:$0xff]  ;;  %v5025_v15 = vld [vmem:[#allocation3 + $0x68] sm:$0xff] }
 0x376   :  { %5707 = vst [vmem:[#allocation36_spill] sm:$0xff] %v5025_v15  ;;  %v5027_v16 = vld [vmem:[#allocation3 + $0x70] sm:$0xff]  ;;  %v5029_v17 = vld [vmem:[#allocation3 + $0x78] sm:$0xff]  ;;  %v5031_v20 = vld [vmem:[#allocation3 + $0x80] sm:$0xff] }
 0x377   :  { %5708 = vst [vmem:[#allocation37_spill] sm:$0xff] %v5029_v17  ;;  %v5033_v21 = vld [vmem:[#allocation3 + $0x88] sm:$0xff]  ;;  %v5035_v22 = vld [vmem:[#allocation3 + $0x90] sm:$0xff]  ;;  %v5037_v30 = vld [vmem:[#allocation3 + $0x98] sm:$0xff] }
 0x378   :  { %5709 = vst [vmem:[#allocation38_spill] sm:$0xff] %v5033_v21  ;;  %5710 = vst [vmem:[#allocation39_spill] sm:$0xff] %v5037_v30  ;;  %v5039_v31 = vld [vmem:[#allocation3 + $0xa0] sm:$0xff]  ;;  %v5041_v32 = vld [vmem:[#allocation3 + $0xa8] sm:$0xff] }
 0x379   :  { %5711 = vst [vmem:[#allocation40_spill] sm:$0xff] %v5041_v32  ;;  %v5043_v33 = vld [vmem:[#allocation3 + $0xb0] sm:$0xff]  ;;  %v5045_v34 = vld [vmem:[#allocation3 + $0xb8] sm:$0xff]  ;;  %v5047_v35 = vld [vmem:[#allocation3 + $0xc0] sm:$0xff] }
 0x37a   :  { %5712 = vst [vmem:[#allocation41_spill] sm:$0xff] %v5045_v34  ;;  %v5049_v36 = vld [vmem:[#allocation3 + $0xc8] sm:$0xff]  ;;  %v5051_v37 = vld [vmem:[#allocation3 + $0xd0] sm:$0xff]  ;;  %v5053_v38 = vld [vmem:[#allocation3 + $0xd8] sm:$0xff] }
 0x37b   :  { %5713 = vst [vmem:[#allocation42_spill] sm:$0xff] %v5049_v36  ;;  %5714 = vst [vmem:[#allocation43_spill] sm:$0xff] %v5053_v38  ;;  %v5055_v39 = vld [vmem:[#allocation3 + $0xe0] sm:$0xff]  ;;  %v5057_v40 = vld [vmem:[#allocation3 + $0xe8] sm:$0xff] }
 0x37c   :  { %5715 = vst [vmem:[#allocation44_spill] sm:$0xff] %v5057_v40  ;;  %v5059_v41 = vld [vmem:[#allocation3 + $0xf0] sm:$0xff]  ;;  %v5061_v42 = vld [vmem:[#allocation3 + $0xf8] sm:$0xff]  ;;  %v5063_v44 = vld [vmem:[#allocation3 + $0x100] sm:$0xff] }
 0x37d   :  { %5716 = vst [vmem:[#allocation45_spill] sm:$0xff] %v5061_v42  ;;  %5717 = vst [vmem:[#allocation46_spill] sm:$0xff] %v5063_v44  ;;  %v5065_v45 = vld [vmem:[#allocation3 + $0x108] sm:$0xff]  ;;  %v5067_v46 = vld [vmem:[#allocation3 + $0x110] sm:$0xff] }
 0x37e   :  { %5718 = vst [vmem:[#allocation47_spill] sm:$0xff] %v5065_v45  ;;  %5719 = vst [vmem:[#allocation48_spill] sm:$0xff] %v5067_v46  ;;  %v5069_v47 = vld [vmem:[#allocation3 + $0x118] sm:$0xff]  ;;  %v5071_v9 = vld [vmem:[#allocation3 + $0x120] sm:$0xff] }
 0x37f   :  { %5720 = vst [vmem:[#allocation49_spill] sm:$0xff] %v5069_v47  ;;  %5721 = vst [vmem:[#allocation50_spill] sm:$0xff] %v5071_v9  ;;  %v5073_v18 = vld [vmem:[#allocation3 + $0x128] sm:$0xff]  ;;  %v5075_v19 = vld [vmem:[#allocation3 + $0x130] sm:$0xff] }
 0x380   :  { %5722 = vst [vmem:[#allocation51_spill] sm:$0xff] %v5073_v18  ;;  %5723 = vst [vmem:[#allocation52_spill] sm:$0xff] %v5075_v19  ;;  %v5077_v27 = vld [vmem:[#allocation3 + $0x138] sm:$0xff]  ;;  %v5079_v49 = vld [vmem:[#allocation3 + $0x140] sm:$0xff] }
 0x381   :  { %5724 = vst [vmem:[#allocation53_spill] sm:$0xff] %v5077_v27  ;;  %5725 = vst [vmem:[#allocation54_spill] sm:$0xff] %v5079_v49  ;;  %v5081_v51 = vld [vmem:[#allocation3 + $0x148] sm:$0xff]  ;;  %v5083_v52 = vld [vmem:[#allocation3 + $0x150] sm:$0xff] }
 0x382   :  { %5726 = vst [vmem:[#allocation55_spill] sm:$0xff] %v5081_v51  ;;  %5727 = vst [vmem:[#allocation56_spill] sm:$0xff] %v5083_v52  ;;  %v5085_v53 = vld [vmem:[#allocation3 + $0x158] sm:$0xff]  ;;  %v5087_v54 = vld [vmem:[#allocation3 + $0x160] sm:$0xff] }
 0x383   :  { %5728 = vst [vmem:[#allocation57_spill] sm:$0xff] %v5085_v53  ;;  %5729 = vst [vmem:[#allocation58_spill] sm:$0xff] %v5087_v54  ;;  %v5089_v55 = vld [vmem:[#allocation3 + $0x168] sm:$0xff]  ;;  %v5091_v56 = vld [vmem:[#allocation3 + $0x170] sm:$0xff] }
 0x384   :  { %5730 = vst [vmem:[#allocation59_spill] sm:$0xff] %v5089_v55  ;;  %5731 = vst [vmem:[#allocation60_spill] sm:$0xff] %v5091_v56  ;;  %v5093_v58 = vld [vmem:[#allocation3 + $0x178] sm:$0xff]  ;;  %v5095_v59 = vld [vmem:[#allocation3 + $0x180] sm:$0xff] }
 0x385   :  { %5732 = vst [vmem:[#allocation61_spill] sm:$0xff] %v5093_v58  ;;  %5733 = vst [vmem:[#allocation62_spill] sm:$0xff] %v5095_v59  ;;  %v5097_v61 = vld [vmem:[#allocation3 + $0x188] sm:$0xff]  ;;  %v5099_v28 = vld [vmem:[#allocation3 + $0x190] sm:$0xff] }
 0x386   :  { %5734 = vst [vmem:[#allocation63_spill] sm:$0xff] %v5097_v61  ;;  %5735 = vst [vmem:[#allocation64_spill] sm:$0xff] %v5099_v28  ;;  %v5101_v0 = vld [vmem:[#allocation3 + $0x198] sm:$0xff]  ;;  %v5103_v29 = vld [vmem:[#allocation3 + $0x1a0] sm:$0xff] }
 0x387   :  { %5736 = vst [vmem:[#allocation65_spill] sm:$0xff] %v5101_v0  ;;  %5737 = vst [vmem:[#allocation66_spill] sm:$0xff] %v5103_v29  ;;  %v5105_v26 = vld [vmem:[#allocation3 + $0x1a8] sm:$0xff]  ;;  %v5107_v23 = vld [vmem:[#allocation3 + $0x1b0] sm:$0xff] }
 0x388   :  { %5738 = vst [vmem:[#allocation67_spill] sm:$0xff] %v5105_v26  ;;  %v5109_v45 = vld [vmem:[#allocation3 + $0x1b8] sm:$0xff]  ;;  %v5111_v47 = vld [vmem:[#allocation3 + $0x1c0] sm:$0xff]  ;;  %v5113_v18 = vld [vmem:[#allocation3 + $0x1c8] sm:$0xff] }
 0x389   :  { %5739 = vst [vmem:[#allocation68_spill] sm:$0xff] %v5109_v45  ;;  %5740 = vst [vmem:[#allocation69_spill] sm:$0xff] %v5113_v18  ;;  %v5115_v27 = vld [vmem:[#allocation3 + $0x1d0] sm:$0xff]  ;;  %v5117_v51 = vld [vmem:[#allocation3 + $0x1d8] sm:$0xff] }
 0x38a   :  { %5741 = vst [vmem:[#allocation70_spill] sm:$0xff] %v5117_v51  ;;  %v5119_v53 = vld [vmem:[#allocation3 + $0x1e0] sm:$0xff]  ;;  %v5121_v55 = vld [vmem:[#allocation3 + $0x1e8] sm:$0xff]  ;;  %v5123_v58 = vld [vmem:[#allocation3 + $0x1f0] sm:$0xff] }
 0x38b   :  { %5742 = vst [vmem:[#allocation71_spill] sm:$0xff] %v5121_v55  ;;  %v5125_v61 = vld [vmem:[#allocation3 + $0x1f8] sm:$0xff]  ;;  %v5127_v0 = vld [vmem:[#allocation3 + $0x200] sm:$0xff]  ;;  %v5129_v26 = vld [vmem:[#allocation3 + $0x208] sm:$0xff] }
 0x38c   :  { %5743 = vst [vmem:[#allocation72_spill] sm:$0xff] %v5125_v61  ;;  %5744 = vst [vmem:[#allocation73_spill] sm:$0xff] %v5129_v26  ;;  %v5131_v45 = vld [vmem:[#allocation3 + $0x210] sm:$0xff]  ;;  %v5133_v50 = vld [vmem:[#allocation3 + $0x218] sm:$0xff] }
 0x38d   :  { %5745 = vst [vmem:[#allocation74_spill] sm:$0xff] %v5133_v50  ;;  %v5135_v18 = vld [vmem:[#allocation3 + $0x220] sm:$0xff]  ;;  %v5137_v7 = vld [vmem:[#allocation3 + $0x228] sm:$0xff]  ;;  %v5139_v51 = vld [vmem:[#allocation3 + $0x230] sm:$0xff] }
 0x38e   :  { %5746 = vst [vmem:[#allocation75_spill] sm:$0xff] %v5137_v7  ;;  %v5141_v12 = vld [vmem:[#allocation3 + $0x238] sm:$0xff]  ;;  %v5143_v55 = vld [vmem:[#allocation3 + $0x240] sm:$0xff]  ;;  %v5145_v63 = vld [vmem:[#allocation3 + $0x248] sm:$0xff] }
 0x38f   :  { %5747 = vst [vmem:[#allocation76_spill] sm:$0xff] %v5141_v12  ;;  %5748 = vst [vmem:[#allocation77_spill] sm:$0xff] %v5145_v63  ;;  %v5147_v61 = vld [vmem:[#allocation3 + $0x250] sm:$0xff]  ;;  %v5149_v5 = vld [vmem:[#allocation3 + $0x258] sm:$0xff] }
 0x390   :  { %5749 = vst [vmem:[#allocation78_spill] sm:$0xff] %v5149_v5  ;;  %v5151_v26 = vld [vmem:[#allocation3 + $0x260] sm:$0xff]  ;;  %v5153_v14 = vld [vmem:[#allocation3 + $0x268] sm:$0xff]  ;;  %v5155_v50 = vld [vmem:[#allocation3 + $0x270] sm:$0xff] }
 0x391   :  { %5750 = vst [vmem:[#allocation79_spill] sm:$0xff] %v5153_v14  ;;  %v5157_v15 = vld [vmem:[#allocation3 + $0x278] sm:$0xff]  ;;  %v5159_v7 = vld [vmem:[#allocation3 + $0x280] sm:$0xff]  ;;  %v5161_v17 = vld [vmem:[#allocation3 + $0x288] sm:$0xff] }
 0x392   :  { %5751 = vst [vmem:[#allocation80_spill] sm:$0xff] %v5157_v15  ;;  %5752 = vst [vmem:[#allocation81_spill] sm:$0xff] %v5161_v17  ;;  %v5163_v12 = vld [vmem:[#allocation3 + $0x290] sm:$0xff]  ;;  %v5165_v21 = vld [vmem:[#allocation3 + $0x298] sm:$0xff] }
 0x393   :  { %5753 = vst [vmem:[#allocation82_spill] sm:$0xff] %v5165_v21  ;;  %v5167_v63 = vld [vmem:[#allocation3 + $0x2a0] sm:$0xff]  ;;  %v5169_v30 = vld [vmem:[#allocation3 + $0x2a8] sm:$0xff]  ;;  %v5171_v5 = vld [vmem:[#allocation3 + $0x2b0] sm:$0xff] }
 0x394   :  { %5754 = vst [vmem:[#allocation83_spill] sm:$0xff] %v5169_v30  ;;  %v5173_v32 = vld [vmem:[#allocation3 + $0x2b8] sm:$0xff]  ;;  %v5175_v14 = vld [vmem:[#allocation3 + $0x2c0] sm:$0xff]  ;;  %v5177_v34 = vld [vmem:[#allocation3 + $0x2c8] sm:$0xff] }
 0x395   :  { %5755 = vst [vmem:[#allocation84_spill] sm:$0xff] %v5173_v32  ;;  %5756 = vst [vmem:[#allocation85_spill] sm:$0xff] %v5177_v34  ;;  %v5179_v15 = vld [vmem:[#allocation3 + $0x2d0] sm:$0xff]  ;;  %v5181_v2 = vld [vmem:[#allocation3 + $0x2d8] sm:$0xff] }
 0x396   :  { %5757 = vst [vmem:[#allocation86_spill] sm:$0xff] %v5181_v2  ;;  %v5183_v17 = vld [vmem:[#allocation3 + $0x2e0] sm:$0xff]  ;;  %v5185_v62 = vld [vmem:[#allocation3 + $0x2e8] sm:$0xff]  ;;  %v5187_v21 = vld [vmem:[#allocation3 + $0x2f0] sm:$0xff] }
 0x397   :  { %5758 = vst [vmem:[#allocation87_spill] sm:$0xff] %v5185_v62  ;;  %v5189_v36 = vld [vmem:[#allocation3 + $0x2f8] sm:$0xff]  ;;  %v5191_v30 = vld [vmem:[#allocation3 + $0x300] sm:$0xff]  ;;  %v5193_v38 = vld [vmem:[#allocation3 + $0x308] sm:$0xff] }
 0x398   :  { %5759 = vst [vmem:[#allocation88_spill] sm:$0xff] %v5189_v36  ;;  %5760 = vst [vmem:[#allocation89_spill] sm:$0xff] %v5191_v30  ;;  %v5195_v32 = vld [vmem:[#allocation3 + $0x310] sm:$0xff]  ;;  %v5197_v40 = vld [vmem:[#allocation3 + $0x318] sm:$0xff] }
 0x399   :  { %5761 = vst [vmem:[#allocation90_spill] sm:$0xff] %v5193_v38  ;;  %5762 = vst [vmem:[#allocation91_spill] sm:$0xff] %v5195_v32  ;;  %v5199_v34 = vld [vmem:[#allocation3 + $0x320] sm:$0xff]  ;;  %v5201_v42 = vld [vmem:[#allocation3 + $0x328] sm:$0xff] }
 0x39a   :  { %5763 = vst [vmem:[#allocation92_spill] sm:$0xff] %v5197_v40  ;;  %5764 = vst [vmem:[#allocation93_spill] sm:$0xff] %v5199_v34  ;;  %v5203_v2 = vld [vmem:[#allocation3 + $0x330] sm:$0xff]  ;;  %v5205_v44 = vld [vmem:[#allocation3 + $0x338] sm:$0xff] }
 0x39b   :  { %5765 = vst [vmem:[#allocation94_spill] sm:$0xff] %v5201_v42  ;;  %5766 = vst [vmem:[#allocation95_spill] sm:$0xff] %v5203_v2  ;;  %v5207_v62 = vld [vmem:[#allocation3 + $0x340] sm:$0xff]  ;;  %v5209_v46 = vld [vmem:[#allocation3 + $0x348] sm:$0xff] }
 0x39c   :  { %5767 = vst [vmem:[#allocation96_spill] sm:$0xff] %v5205_v44  ;;  %5768 = vst [vmem:[#allocation97_spill] sm:$0xff] %v5207_v62  ;;  %v5211_v36 = vld [vmem:[#allocation3 + $0x350] sm:$0xff]  ;;  %v5213_v30 = vld [vmem:[#allocation3 + $0x358] sm:$0xff] }
 0x39d   :  { %5769 = vst [vmem:[#allocation98_spill] sm:$0xff] %v5209_v46  ;;  %5770 = vst [vmem:[#allocation99_spill] sm:$0xff] %v5211_v36  ;;  %v5215_v38 = vld [vmem:[#allocation3 + $0x360] sm:$0xff]  ;;  %v5217_v32 = vld [vmem:[#allocation3 + $0x368] sm:$0xff] }
 0x39e   :  { %5771 = vst [vmem:[#allocation100_spill] sm:$0xff] %v5213_v30  ;;  %5772 = vst [vmem:[#allocation101_spill] sm:$0xff] %v5215_v38  ;;  %v5219_v40 = vld [vmem:[#allocation3 + $0x370] sm:$0xff]  ;;  %v5221_v34 = vld [vmem:[#allocation3 + $0x378] sm:$0xff] }
 0x39f   :  { %5773 = vst [vmem:[#allocation102_spill] sm:$0xff] %v5217_v32  ;;  %5774 = vst [vmem:[#allocation103_spill] sm:$0xff] %v5219_v40  ;;  %v5223_v42 = vld [vmem:[#allocation3 + $0x380] sm:$0xff]  ;;  %v5225_v2 = vld [vmem:[#allocation3 + $0x388] sm:$0xff] }
 0x3a0   :  { %5775 = vst [vmem:[#allocation104_spill] sm:$0xff] %v5221_v34  ;;  %5776 = vst [vmem:[#allocation105_spill] sm:$0xff] %v5223_v42  ;;  %v5227_v44 = vld [vmem:[#allocation3 + $0x390] sm:$0xff]  ;;  %v5229_v9 = vld [vmem:[#allocation3 + $0x398] sm:$0xff] }
 0x3a1   :  { %5777 = vst [vmem:[#allocation106_spill] sm:$0xff] %v5225_v2  ;;  %5778 = vst [vmem:[#allocation107_spill] sm:$0xff] %v5227_v44  ;;  %v5231_v46 = vld [vmem:[#allocation3 + $0x3a0] sm:$0xff]  ;;  %v5233_v19 = vld [vmem:[#allocation3 + $0x3a8] sm:$0xff] }
 0x3a2   :  { %5779 = vst [vmem:[#allocation108_spill] sm:$0xff] %v5229_v9  ;;  %5780 = vst [vmem:[#allocation109_spill] sm:$0xff] %v5231_v46  ;;  %v5235_v30 = vld [vmem:[#allocation3 + $0x3b0] sm:$0xff]  ;;  %v5237_v62 = vld [vmem:[#allocation3 + $0x3b8] sm:$0xff] }
 0x3a3   :  { %5781 = vst [vmem:[#allocation110_spill] sm:$0xff] %v5233_v19  ;;  %5782 = vst [vmem:[#allocation111_spill] sm:$0xff] %v5235_v30  ;;  %v5239_v32 = vld [vmem:[#allocation3 + $0x3c0] sm:$0xff]  ;;  %v5241_v36 = vld [vmem:[#allocation3 + $0x3c8] sm:$0xff] }
 0x3a4   :  { %5783 = vst [vmem:[#allocation112_spill] sm:$0xff] %v5237_v62  ;;  %5784 = vst [vmem:[#allocation113_spill] sm:$0xff] %v5241_v36  ;;  %v5243_v34 = vld [vmem:[#allocation3 + $0x3d0] sm:$0xff]  ;;  %v5245_v49 = vld [vmem:[#allocation3 + $0x3d8] sm:$0xff] }
 0x3a5   :  { %5785 = vst [vmem:[#allocation114_spill] sm:$0xff] %v5245_v49  ;;  %v5247_v2 = vld [vmem:[#allocation3 + $0x3e0] sm:$0xff]  ;;  %v5249_v52 = vld [vmem:[#allocation3 + $0x3e8] sm:$0xff]  ;;  %v5251_v9 = vld [vmem:[#allocation3 + $0x3f0] sm:$0xff] }
 0x3a6   :  { %5786 = vst [vmem:[#allocation115_spill] sm:$0xff] %v5249_v52  ;;  %v5253_v38 = vld [vmem:[#allocation3 + $0x3f8] sm:$0xff] }
 0x3a7   :  { %5787 = vst [vmem:[#allocation116_spill] sm:$0xff] %v5253_v38 }
 0x3a8   :  { %4819 = dma.done.wait [#allocation4 + $0x2], 23040 }
 0x3a9   :  { %4820 = vsyncadd [#allocation4 + $0x2], 4294944256  ;;  %v5257_v19 = vpack.c.bf16 %v4975_v43, %v4975_v43  ;;  %v5261_v62 = vpack.c.bf16 %v4987_v57, %v4987_v57  ;;  %v4404_v36 = vld [vmem:[#allocation3 + $0x4e4] ss:$16 sps:$4 sm:$0xff]   ;;  %v4408_v52 = vld [vmem:[#allocation3 + $0x4e0] ss:$16 sps:$4 sm:$0xff]  }
 0x3aa   :  { %v4406_v49 = vld [vmem:[#allocation3 + $0x6e4] ss:$16 sps:$4 sm:$0xff]   ;;  %2181 = vmatprep.subr.bf16.mxu0 %v4404_v36  ;;  %v4409_v40 = vld [vmem:[#allocation3 + $0x6e0] ss:$16 sps:$4 sm:$0xff]   ;;  %v4577_v29 = vld [vmem:[#allocation3 + $0x66c] ss:$16 sps:$4 sm:$0xff]  }
 0x3ab   :  { %2213 = vmatprep.mubr.bf16.mxu0 %v5257_v19  ;;  %2254 = vmatprep.mubr.bf16.mxu1 %v5261_v62  ;;  %v4410_v38 = vld [vmem:[#allocation3 + $0x4c4] ss:$16 sps:$4 sm:$0xff]   ;;  %v4414_v43 = vld [vmem:[#allocation3 + $0x4c0] ss:$16 sps:$4 sm:$0xff]   ;;  %s4836_s4 = smov 48   ;;  %vm3538_vm6 = vcmask 97280  }
 0x3ac   :  { %2222 = vmatprep.subr.bf16.mxu1 %v4406_v49  ;;  %2182 = vmatpush1.bf16.msra.mxu0 %v4408_v52  ;;  %v4412_v54 = vld [vmem:[#allocation3 + $0x6c4] ss:$16 sps:$4 sm:$0xff]   ;;  %v4415_v56 = vld [vmem:[#allocation3 + $0x6c0] ss:$16 sps:$4 sm:$0xff]   ;;  %s4837_s25 = smov 80   ;;  %vm3457_vm7 = vcmask 523264  }
 0x3ad   :  { %2223 = vmatpush1.bf16.msra.mxu1 %v4409_v40  ;;  %2183 = vmatprep.subr.bf16.mxu0 %v4410_v38  ;;  %v4416_v57 = vld [vmem:[#allocation3 + $0x4a4] ss:$16 sps:$4 sm:$0xff]   ;;  %v4420_v44 = vld [vmem:[#allocation3 + $0x4a0] ss:$16 sps:$4 sm:$0xff]   ;;  %vm3651_vm8 = vcmask 326656   ;;  %s4838_s26 = smov [#allocation11]  }
 0x3ae   :  { %2224 = vmatprep.subr.bf16.mxu1 %v4412_v54  ;;  %v4418_v42 = vld [vmem:[#allocation3 + $0x6a4] ss:$16 sps:$4 sm:$0xff]   ;;  %v4421_v59 = vld [vmem:[#allocation3 + $0x6a0] ss:$16 sps:$4 sm:$0xff]   ;;  %s3818_s27 = sshll.u32 %s4838_s26, 4  ;;  %s3819_s27 = int_to_ptr.vmem [resolvable:$true] %s3818_s27 }
 0x3af   :  { %v4422_v28 = vld [vmem:[#allocation3 + $0x484] ss:$16 sps:$4 sm:$0xff]   ;;  %v4426_v46 = vld [vmem:[#allocation3 + $0x480] ss:$16 sps:$4 sm:$0xff]   ;;  %s4791_s28 = scalar_lea.vmem %s3819_s27, 32  ;;  %p4796_p3 = scmp.lt.s32.totalorder %s3819_s27, %s3819_s27 }
 0x3b0   :  { %2184 = vmatpush1.bf16.msra.mxu0 %v4414_v43  ;;  %v4424_v36 = vld [vmem:[#allocation3 + $0x684] ss:$16 sps:$4 sm:$0xff]   ;;  %v4427_v49 = vld [vmem:[#allocation3 + $0x680] ss:$16 sps:$4 sm:$0xff]   ;;  %p4792_p2 = scmp.ne.s32.totalorder %s3819_s27, %s4791_s28  ;;  %p4797_p4 = scmp.lt.s32.totalorder %s4791_s28, %s4791_s28 }
 0x3b1   :  { %2225 = vmatpush1.bf16.msra.mxu1 %v4415_v56  ;;  %2185 = vmatprep.subr.bf16.mxu0 %v4416_v57  ;;  %v4428_v40 = vld [vmem:[#allocation3 + $0x464] ss:$16 sps:$4 sm:$0xff]   ;;  %v4432_v52 = vld [vmem:[#allocation3 + $0x460] ss:$16 sps:$4 sm:$0xff]  }
 0x3b2   :  { %2226 = vmatprep.subr.bf16.mxu1 %v4418_v42  ;;  %v4430_v38 = vld [vmem:[#allocation3 + $0x664] ss:$16 sps:$4 sm:$0xff]   ;;  %v4433_v54 = vld [vmem:[#allocation3 + $0x660] ss:$16 sps:$4 sm:$0xff]   ;;  %p4798_p5 = por %p4797_p4, %p4796_p3 }
 0x3b3   :  { %v4434_v30 = vld [vmem:[#allocation3 + $0x444] ss:$16 sps:$4 sm:$0xff]   ;;  %v4438_v43 = vld [vmem:[#allocation3 + $0x440] ss:$16 sps:$4 sm:$0xff]  }
 0x3b4   :  { %2186 = vmatpush1.bf16.msra.mxu0 %v4420_v44  ;;  %v4436_v56 = vld [vmem:[#allocation3 + $0x644] ss:$16 sps:$4 sm:$0xff]   ;;  %v4439_v42 = vld [vmem:[#allocation3 + $0x640] ss:$16 sps:$4 sm:$0xff]   ;;  %p4799_p6 = pnand %p4798_p5, %p4792_p2 }
 0x3b5   :  { %2227 = vmatpush1.bf16.msra.mxu1 %v4421_v59  ;;  %2187 = vmatprep.subr.bf16.mxu0 %v4422_v28  ;;  %v4440_v57 = vld [vmem:[#allocation3 + $0x424] ss:$16 sps:$4 sm:$0xff]   ;;  %v4444_v59 = vld [vmem:[#allocation3 + $0x420] ss:$16 sps:$4 sm:$0xff]  }
 0x3b6   :  { %2228 = vmatprep.subr.bf16.mxu1 %v4424_v36  ;;  %v4442_v44 = vld [vmem:[#allocation3 + $0x624] ss:$16 sps:$4 sm:$0xff]   ;;  %v4445_v28 = vld [vmem:[#allocation3 + $0x620] ss:$16 sps:$4 sm:$0xff]  }
 0x3b7   :  { %v4446_v36 = vld [vmem:[#allocation3 + $0x404] ss:$16 sps:$4 sm:$0xff]  }
 0x3b8   :  { %2188 = vmatpush1.bf16.msra.mxu0 %v4426_v46  ;;  %v4448_v46 = vld [vmem:[#allocation3 + $0x604] ss:$16 sps:$4 sm:$0xff]  }
 0x3b9   :  { %2229 = vmatpush1.bf16.msra.mxu1 %v4427_v49  ;;  %2189 = vmatprep.subr.bf16.mxu0 %v4428_v40  ;;  %v4450_v49 = vld [vmem:[#allocation3 + $0x400] ss:$16 sps:$4 sm:$0xff]  }
 0x3ba   :  { %2230 = vmatprep.subr.bf16.mxu1 %v4430_v38  ;;  %v4451_v40 = vld [vmem:[#allocation3 + $0x600] ss:$16 sps:$4 sm:$0xff]   ;;  %v4452_v38 = vld [vmem:[#allocation3 + $0x5e4] ss:$16 sps:$4 sm:$0xff]  }
 0x3bc   :  { %2190 = vmatpush1.bf16.msra.mxu0 %v4432_v52  ;;  %v4454_v52 = vld [vmem:[#allocation3 + $0x7e4] ss:$16 sps:$4 sm:$0xff]  }
 0x3bd   :  { %2231 = vmatpush1.bf16.msra.mxu1 %v4433_v54  ;;  %2191 = vmatprep.subr.bf16.mxu0 %v4434_v30  ;;  %v4456_v54 = vld [vmem:[#allocation3 + $0x5e0] ss:$16 sps:$4 sm:$0xff]  }
 0x3be   :  { %2232 = vmatprep.subr.bf16.mxu1 %v4436_v56  ;;  %v4457_v30 = vld [vmem:[#allocation3 + $0x7e0] ss:$16 sps:$4 sm:$0xff]   ;;  %v4458_v56 = vld [vmem:[#allocation3 + $0x5c4] ss:$16 sps:$4 sm:$0xff]  }
 0x3c0   :  { %2192 = vmatpush1.bf16.msra.mxu0 %v4438_v43  ;;  %v4460_v43 = vld [vmem:[#allocation3 + $0x7c4] ss:$16 sps:$4 sm:$0xff]  }
 0x3c1   :  { %2233 = vmatpush1.bf16.msra.mxu1 %v4439_v42  ;;  %2193 = vmatprep.subr.bf16.mxu0 %v4440_v57  ;;  %v4462_v42 = vld [vmem:[#allocation3 + $0x5c0] ss:$16 sps:$4 sm:$0xff]  }
 0x3c2   :  { %2234 = vmatprep.subr.bf16.mxu1 %v4442_v44  ;;  %v4463_v57 = vld [vmem:[#allocation3 + $0x7c0] ss:$16 sps:$4 sm:$0xff]   ;;  %v4464_v44 = vld [vmem:[#allocation3 + $0x5a4] ss:$16 sps:$4 sm:$0xff]  }
 0x3c4   :  { %2194 = vmatpush1.bf16.msra.mxu0 %v4444_v59  ;;  %v4466_v59 = vld [vmem:[#allocation3 + $0x7a4] ss:$16 sps:$4 sm:$0xff]  }
 0x3c5   :  { %2235 = vmatpush1.bf16.msra.mxu1 %v4445_v28  ;;  %2195 = vmatprep.subr.bf16.mxu0 %v4446_v36  ;;  %v4468_v28 = vld [vmem:[#allocation3 + $0x5a0] ss:$16 sps:$4 sm:$0xff]  }
 0x3c6   :  { %2236 = vmatprep.subr.bf16.mxu1 %v4448_v46  ;;  %v4469_v36 = vld [vmem:[#allocation3 + $0x7a0] ss:$16 sps:$4 sm:$0xff]   ;;  %v4470_v46 = vld [vmem:[#allocation3 + $0x584] ss:$16 sps:$4 sm:$0xff]  }
 0x3c8   :  { %2196 = vmatpush1.bf16.msra.mxu0 %v4450_v49  ;;  %v4472_v49 = vld [vmem:[#allocation3 + $0x784] ss:$16 sps:$4 sm:$0xff]  }
 0x3c9   :  { %2237 = vmatpush1.bf16.msra.mxu1 %v4451_v40  ;;  %2197 = vmatprep.subr.bf16.mxu0 %v4452_v38  ;;  %v4474_v40 = vld [vmem:[#allocation3 + $0x580] ss:$16 sps:$4 sm:$0xff]  }
 0x3ca   :  { %2238 = vmatprep.subr.bf16.mxu1 %v4454_v52  ;;  %v4475_v38 = vld [vmem:[#allocation3 + $0x780] ss:$16 sps:$4 sm:$0xff]   ;;  %v4476_v52 = vld [vmem:[#allocation3 + $0x564] ss:$16 sps:$4 sm:$0xff]  }
 0x3cc   :  { %2198 = vmatpush2.bf16.msra.mxu0 %v4456_v54  ;;  %v4478_v54 = vld [vmem:[#allocation3 + $0x764] ss:$16 sps:$4 sm:$0xff]  }
 0x3cd   :  { %2239 = vmatpush2.bf16.msra.mxu1 %v4457_v30  ;;  %2199 = vmatprep.subr.bf16.mxu0 %v4458_v56  ;;  %v4480_v30 = vld [vmem:[#allocation3 + $0x560] ss:$16 sps:$4 sm:$0xff]  }
 0x3ce   :  { %2240 = vmatprep.subr.bf16.mxu1 %v4460_v43  ;;  %v4481_v56 = vld [vmem:[#allocation3 + $0x760] ss:$16 sps:$4 sm:$0xff]   ;;  %v4482_v43 = vld [vmem:[#allocation3 + $0x544] ss:$16 sps:$4 sm:$0xff]  }
 0x3d0   :  { %2200 = vmatpush2.bf16.msra.mxu0 %v4462_v42  ;;  %v4484_v42 = vld [vmem:[#allocation3 + $0x744] ss:$16 sps:$4 sm:$0xff]  }
 0x3d1   :  { %2241 = vmatpush2.bf16.msra.mxu1 %v4463_v57  ;;  %2201 = vmatprep.subr.bf16.mxu0 %v4464_v44  ;;  %v4486_v57 = vld [vmem:[#allocation3 + $0x540] ss:$16 sps:$4 sm:$0xff]  }
 0x3d2   :  { %2242 = vmatprep.subr.bf16.mxu1 %v4466_v59  ;;  %v4487_v44 = vld [vmem:[#allocation3 + $0x740] ss:$16 sps:$4 sm:$0xff]   ;;  %v4488_v59 = vld [vmem:[#allocation3 + $0x524] ss:$16 sps:$4 sm:$0xff]  }
 0x3d4   :  { %2202 = vmatpush2.bf16.msra.mxu0 %v4468_v28  ;;  %v4490_v28 = vld [vmem:[#allocation3 + $0x724] ss:$16 sps:$4 sm:$0xff]  }
 0x3d5   :  { %2243 = vmatpush2.bf16.msra.mxu1 %v4469_v36  ;;  %2203 = vmatprep.subr.bf16.mxu0 %v4470_v46  ;;  %v4492_v36 = vld [vmem:[#allocation3 + $0x520] ss:$16 sps:$4 sm:$0xff]  }
 0x3d6   :  { %2244 = vmatprep.subr.bf16.mxu1 %v4472_v49  ;;  %v4493_v46 = vld [vmem:[#allocation3 + $0x720] ss:$16 sps:$4 sm:$0xff]   ;;  %v4494_v49 = vld [vmem:[#allocation3 + $0x504] ss:$16 sps:$4 sm:$0xff]  }
 0x3d8   :  { %2204 = vmatpush2.bf16.msra.mxu0 %v4474_v40  ;;  %v4496_v40 = vld [vmem:[#allocation3 + $0x704] ss:$16 sps:$4 sm:$0xff]  }
 0x3d9   :  { %2245 = vmatpush2.bf16.msra.mxu1 %v4475_v38  ;;  %2205 = vmatprep.subr.bf16.mxu0 %v4476_v52  ;;  %v4498_v38 = vld [vmem:[#allocation3 + $0x500] ss:$16 sps:$4 sm:$0xff]  }
 0x3da   :  { %2246 = vmatprep.subr.bf16.mxu1 %v4478_v54  ;;  %v4499_v52 = vld [vmem:[#allocation3 + $0x700] ss:$16 sps:$4 sm:$0xff]   ;;  %v4502_v54 = vld [vmem:[#allocation3 + $0x8e4] ss:$16 sps:$4 sm:$0xff]  }
 0x3dc   :  { %2206 = vmatpush2.bf16.msra.mxu0 %v4480_v30  ;;  %v4505_v30 = vld [vmem:[#allocation3 + $0x4ec] ss:$16 sps:$4 sm:$0xff]  }
 0x3dd   :  { %2247 = vmatpush2.bf16.msra.mxu1 %v4481_v56  ;;  %2207 = vmatprep.subr.bf16.mxu0 %v4482_v43  ;;  %v5267_v56 = vpack.c.bf16 %v4978_v24, %v4978_v24  ;;  %v5271_v43 = vpack.c.bf16 %v4980_v48, %v4980_v48  ;;  %v4514_v24 = vld [vmem:[#allocation3 + $0x8a4] ss:$16 sps:$4 sm:$0xff]   ;;  %v4517_v48 = vld [vmem:[#allocation3 + $0x4ac] ss:$16 sps:$4 sm:$0xff]  }
 0x3de   :  { %2248 = vmatprep.subr.bf16.mxu1 %v4484_v42  ;;  %v4500_v42 = vld [vmem:[#allocation3 + $0x8e0] ss:$16 sps:$4 sm:$0xff]  }
 0x3e0   :  { %2208 = vmatpush2.bf16.msra.mxu0 %v4486_v57  ;;  %v4503_v57 = vld [vmem:[#allocation3 + $0x4e8] ss:$16 sps:$4 sm:$0xff]  }
 0x3e1   :  { %2249 = vmatpush2.bf16.msra.mxu1 %v4487_v44  ;;  %2209 = vmatprep.subr.bf16.mxu0 %v4488_v59  ;;  %v4508_v44 = vld [vmem:[#allocation3 + $0x8c4] ss:$16 sps:$4 sm:$0xff]   ;;  %v4511_v59 = vld [vmem:[#allocation3 + $0x4cc] ss:$16 sps:$4 sm:$0xff]  }
 0x3e2   :  { %2250 = vmatprep.subr.bf16.mxu1 %v4490_v28  ;;  %v4506_v28 = vld [vmem:[#allocation3 + $0x8c0] ss:$16 sps:$4 sm:$0xff]  }
 0x3e4   :  { %2210 = vmatpush2.bf16.msra.mxu0 %v4492_v36  ;;  %v4509_v36 = vld [vmem:[#allocation3 + $0x4c8] ss:$16 sps:$4 sm:$0xff]  }
 0x3e5   :  { %2251 = vmatpush2.bf16.msra.mxu1 %v4493_v46  ;;  %2211 = vmatprep.subr.bf16.mxu0 %v4494_v49  ;;  %v5788_v46 = vmov 0   ;;  %v4512_v49 = vld [vmem:[#allocation3 + $0x8a0] ss:$16 sps:$4 sm:$0xff]  }
 0x3e6   :  { %2252 = vmatprep.subr.bf16.mxu1 %v4496_v40  ;;  %v4515_v40 = vld [vmem:[#allocation3 + $0x4a8] ss:$16 sps:$4 sm:$0xff]  }
 0x3e8   :  { %2212 = vmatpush2.bf16.msra.mxu0 %v4498_v38  ;;  %v4520_v38 = vld [vmem:[#allocation3 + $0x884] ss:$16 sps:$4 sm:$0xff]  }
 0x3e9   :  { %2253 = vmatpush2.bf16.msra.mxu1 %v4499_v52  ;;  %2263 = vmatprep.subr.bf16.mxu0 %v4502_v54  ;;  %v4523_v52 = vld [vmem:[#allocation3 + $0x48c] ss:$16 sps:$4 sm:$0xff]   ;;  %v4518_v54 = vld [vmem:[#allocation3 + $0x880] ss:$16 sps:$4 sm:$0xff]  }
 0x3ea   :  { %2304 = vmatprep.subr.bf16.mxu1 %v4505_v30  ;;  %v4521_v30 = vld [vmem:[#allocation3 + $0x488] ss:$16 sps:$4 sm:$0xff]  }
 0x3eb   :  { %2214 = vmatmul.mubr.bf16.vlgmr.msra.gmra.mxu0 %v5267_v56 }
 0x3ec   :  { %2255 = vmatmul.mubr.bf16.vlgmr.msra.gmra.mxu1 %v5271_v43  ;;  %2264 = vmatpush1.bf16.msra.mxu0 %v4500_v42  ;;  %v4526_v42 = vld [vmem:[#allocation3 + $0x864] ss:$16 sps:$4 sm:$0xff]  }
 0x3ed   :  { %2305 = vmatpush1.bf16.msra.mxu1 %v4503_v57  ;;  %2265 = vmatprep.subr.bf16.mxu0 %v4508_v44  ;;  %v4529_v57 = vld [vmem:[#allocation3 + $0x46c] ss:$16 sps:$4 sm:$0xff]   ;;  %v4524_v44 = vld [vmem:[#allocation3 + $0x860] ss:$16 sps:$4 sm:$0xff]  }
 0x3ee   :  { %2306 = vmatprep.subr.bf16.mxu1 %v4511_v59  ;;  %2295 = vmatprep.mubr.bf16.mxu0 %v5788_v46  ;;  %v4527_v59 = vld [vmem:[#allocation3 + $0x468] ss:$16 sps:$4 sm:$0xff]  }
 0x3ef   :  { %2336 = vmatprep.mubr.bf16.mxu1 %v5257_v19  ;;  %v4532_v19 = vld [vmem:[#allocation3 + $0x844] ss:$16 sps:$4 sm:$0xff]  }
 0x3f0   :  { %2266 = vmatpush1.bf16.msra.mxu0 %v4506_v28  ;;  %v4535_v28 = vld [vmem:[#allocation3 + $0x44c] ss:$16 sps:$4 sm:$0xff]  }
 0x3f1   :  { %2307 = vmatpush1.bf16.msra.mxu1 %v4509_v36  ;;  %2267 = vmatprep.subr.bf16.mxu0 %v4514_v24  ;;  %v4530_v36 = vld [vmem:[#allocation3 + $0x840] ss:$16 sps:$4 sm:$0xff]   ;;  %v4533_v24 = vld [vmem:[#allocation3 + $0x448] ss:$16 sps:$4 sm:$0xff]  }
 0x3f2   :  { %2308 = vmatprep.subr.bf16.mxu1 %v4517_v48  ;;  %v4538_v48 = vld [vmem:[#allocation3 + $0x824] ss:$16 sps:$4 sm:$0xff]  }
 0x3f4   :  { %2268 = vmatpush1.bf16.msra.mxu0 %v4512_v49  ;;  %v4541_v49 = vld [vmem:[#allocation3 + $0x42c] ss:$16 sps:$4 sm:$0xff]  }
 0x3f5   :  { %2309 = vmatpush1.bf16.msra.mxu1 %v4515_v40  ;;  %2269 = vmatprep.subr.bf16.mxu0 %v4520_v38  ;;  %v4536_v40 = vld [vmem:[#allocation3 + $0x820] ss:$16 sps:$4 sm:$0xff]   ;;  %v4539_v38 = vld [vmem:[#allocation3 + $0x428] ss:$16 sps:$4 sm:$0xff]  }
 0x3f6   :  { %2310 = vmatprep.subr.bf16.mxu1 %v4523_v52  ;;  %v4544_v52 = vld [vmem:[#allocation3 + $0x804] ss:$16 sps:$4 sm:$0xff]  }
 0x3f8   :  { %2270 = vmatpush1.bf16.msra.mxu0 %v4518_v54  ;;  %v4547_v54 = vld [vmem:[#allocation3 + $0x40c] ss:$16 sps:$4 sm:$0xff]  }
 0x3f9   :  { %2311 = vmatpush1.bf16.msra.mxu1 %v4521_v30  ;;  %2271 = vmatprep.subr.bf16.mxu0 %v4526_v42  ;;  %v4542_v30 = vld [vmem:[#allocation3 + $0x800] ss:$16 sps:$4 sm:$0xff]   ;;  %v4545_v42 = vld [vmem:[#allocation3 + $0x408] ss:$16 sps:$4 sm:$0xff]  }
 0x3fa   :  { %2312 = vmatprep.subr.bf16.mxu1 %v4529_v57  ;;  %v4550_v57 = vld [vmem:[#allocation3 + $0x5ec] ss:$16 sps:$4 sm:$0xff]  }
 0x3fc   :  { %2272 = vmatpush1.bf16.msra.mxu0 %v4524_v44  ;;  %v4553_v44 = vld [vmem:[#allocation3 + $0x6ec] ss:$16 sps:$4 sm:$0xff]  }
 0x3fd   :  { %2313 = vmatpush1.bf16.msra.mxu1 %v4527_v59  ;;  %2273 = vmatprep.subr.bf16.mxu0 %v4532_v19  ;;  %v5279_v59 = vpack.c.bf16 %v4989_v60, %v4989_v60  ;;  %v4548_v19 = vld [vmem:[#allocation3 + $0x5e8] ss:$16 sps:$4 sm:$0xff]  }
 0x3fe   :  { %2314 = vmatprep.subr.bf16.mxu1 %v4535_v28  ;;  %v4551_v28 = vld [vmem:[#allocation3 + $0x6e8] ss:$16 sps:$4 sm:$0xff]  }
 0x3ff   :  { %v4560_v60 = vld [vmem:[#allocation3 + $0x5a8] ss:$16 sps:$4 sm:$0xff]  }
 0x400   :  { %2274 = vmatpush1.bf16.msra.mxu0 %v4530_v36  ;;  %v4556_v36 = vld [vmem:[#allocation3 + $0x5cc] ss:$16 sps:$4 sm:$0xff]  }
 0x401   :  { %2315 = vmatpush1.bf16.msra.mxu1 %v4533_v24  ;;  %2275 = vmatprep.subr.bf16.mxu0 %v4538_v48  ;;  %v4559_v24 = vld [vmem:[#allocation3 + $0x6cc] ss:$16 sps:$4 sm:$0xff]   ;;  %v4554_v48 = vld [vmem:[#allocation3 + $0x5c8] ss:$16 sps:$4 sm:$0xff]  }
 0x402   :  { %2316 = vmatprep.subr.bf16.mxu1 %v4541_v49  ;;  %v4557_v49 = vld [vmem:[#allocation3 + $0x6c8] ss:$16 sps:$4 sm:$0xff]  }
 0x404   :  { %2276 = vmatpush1.bf16.msra.mxu0 %v4536_v40  ;;  %v4562_v40 = vld [vmem:[#allocation3 + $0x5ac] ss:$16 sps:$4 sm:$0xff]  }
 0x405   :  { %2317 = vmatpush1.bf16.msra.mxu1 %v4539_v38  ;;  %2277 = vmatprep.subr.bf16.mxu0 %v4544_v52  ;;  %v4565_v38 = vld [vmem:[#allocation3 + $0x6ac] ss:$16 sps:$4 sm:$0xff]   ;;  %v4563_v52 = vld [vmem:[#allocation3 + $0x6a8] ss:$16 sps:$4 sm:$0xff]  }
 0x406   :  { %2318 = vmatprep.subr.bf16.mxu1 %v4547_v54  ;;  %v4568_v54 = vld [vmem:[#allocation3 + $0x58c] ss:$16 sps:$4 sm:$0xff]  }
 0x408   :  { %2278 = vmatpush1.bf16.msra.mxu0 %v4542_v30  ;;  %v4571_v30 = vld [vmem:[#allocation3 + $0x68c] ss:$16 sps:$4 sm:$0xff]  }
 0x409   :  { %2319 = vmatpush1.bf16.msra.mxu1 %v4545_v42  ;;  %2345 = vmatprep.subr.bf16.mxu0 %v4553_v44  ;;  %v4566_v42 = vld [vmem:[#allocation3 + $0x588] ss:$16 sps:$4 sm:$0xff]   ;;  %v4574_v44 = vld [vmem:[#allocation3 + $0x56c] ss:$16 sps:$4 sm:$0xff]  }
 0x40a   :  { %2320 = vmatprep.subr.bf16.mxu1 %v4550_v57  ;;  %v4569_v57 = vld [vmem:[#allocation3 + $0x688] ss:$16 sps:$4 sm:$0xff]  }
 0x40b   :  { %2296 = vmatmul.mubr.bf16.vlgmr.msra.gmra.mxu0 %v5279_v59 }
 0x40c   :  { %2346 = vmatpush1.bf16.msra.mxu0 %v4551_v28  ;;  %2377 = vmatprep.mubr.bf16.mxu0 %v5261_v62  ;;  %v4575_v62 = vld [vmem:[#allocation3 + $0x668] ss:$16 sps:$4 sm:$0xff]   ;;  %v4580_v28 = vld [vmem:[#allocation3 + $0x54c] ss:$16 sps:$4 sm:$0xff]  }
 0x40d   :  { %2321 = vmatpush2.bf16.msra.mxu1 %v4548_v19  ;;  %2347 = vmatprep.subr.bf16.mxu0 %v4559_v24  ;;  %v4572_v19 = vld [vmem:[#allocation3 + $0x568] ss:$16 sps:$4 sm:$0xff]  }
 0x40e   :  { %2322 = vmatprep.subr.bf16.mxu1 %v4556_v36  ;;  %v4583_v36 = vld [vmem:[#allocation3 + $0x64c] ss:$16 sps:$4 sm:$0xff]   ;;  %v4578_v24 = vld [vmem:[#allocation3 + $0x548] ss:$16 sps:$4 sm:$0xff]  }
 0x410   :  { %2348 = vmatpush1.bf16.msra.mxu0 %v4557_v49  ;;  %v4586_v49 = vld [vmem:[#allocation3 + $0x52c] ss:$16 sps:$4 sm:$0xff]  }
 0x411   :  { %2323 = vmatpush2.bf16.msra.mxu1 %v4554_v48  ;;  %2349 = vmatprep.subr.bf16.mxu0 %v4565_v38  ;;  %v4581_v48 = vld [vmem:[#allocation3 + $0x648] ss:$16 sps:$4 sm:$0xff]  }
 0x412   :  { %2324 = vmatprep.subr.bf16.mxu1 %v4562_v40  ;;  %v4589_v40 = vld [vmem:[#allocation3 + $0x62c] ss:$16 sps:$4 sm:$0xff]   ;;  %v4584_v38 = vld [vmem:[#allocation3 + $0x528] ss:$16 sps:$4 sm:$0xff]  }
 0x414   :  { %2350 = vmatpush1.bf16.msra.mxu0 %v4563_v52  ;;  %v4592_v52 = vld [vmem:[#allocation3 + $0x50c] ss:$16 sps:$4 sm:$0xff]  }
 0x415   :  { %2325 = vmatpush2.bf16.msra.mxu1 %v4560_v60  ;;  %2351 = vmatprep.subr.bf16.mxu0 %v4571_v30  ;;  %v4587_v60 = vld [vmem:[#allocation3 + $0x628] ss:$16 sps:$4 sm:$0xff]  }
 0x416   :  { %2326 = vmatprep.subr.bf16.mxu1 %v4568_v54  ;;  %v4595_v54 = vld [vmem:[#allocation3 + $0x60c] ss:$16 sps:$4 sm:$0xff]   ;;  %v4593_v30 = vld [vmem:[#allocation3 + $0x608] ss:$16 sps:$4 sm:$0xff]  }
 0x418   :  { %2352 = vmatpush1.bf16.msra.mxu0 %v4569_v57  ;;  %v4601_v57 = vld [vmem:[#allocation3 + $0x8ec] ss:$16 sps:$4 sm:$0xff]  }
 0x419   :  { %2327 = vmatpush2.bf16.msra.mxu1 %v4566_v42  ;;  %2353 = vmatprep.subr.bf16.mxu0 %v4577_v29  ;;  %v4590_v29 = vld [vmem:[#allocation3 + $0x508] ss:$16 sps:$4 sm:$0xff]   ;;  %v4598_v42 = vld [vmem:[#allocation3 + $0x7ec] ss:$16 sps:$4 sm:$0xff]  }
 0x41a   :  { %2328 = vmatprep.subr.bf16.mxu1 %v4574_v44  ;;  %v4596_v44 = vld [vmem:[#allocation3 + $0x7e8] ss:$16 sps:$4 sm:$0xff]  }
 0x41c   :  { %2354 = vmatpush1.bf16.msra.mxu0 %v4575_v62  ;;  %v4604_v62 = vld [vmem:[#allocation3 + $0x7cc] ss:$16 sps:$4 sm:$0xff]  }
 0x41d   :  { %2329 = vmatpush2.bf16.msra.mxu1 %v4572_v19  ;;  %2355 = vmatprep.subr.bf16.mxu0 %v4583_v36  ;;  %v4599_v19 = vld [vmem:[#allocation3 + $0x8e8] ss:$16 sps:$4 sm:$0xff]  }
 0x41e   :  { %2330 = vmatprep.subr.bf16.mxu1 %v4580_v28  ;;  %v4607_v28 = vld [vmem:[#allocation3 + $0x8cc] ss:$16 sps:$4 sm:$0xff]   ;;  %v4602_v36 = vld [vmem:[#allocation3 + $0x7c8] ss:$16 sps:$4 sm:$0xff]  }
 0x420   :  { %2356 = vmatpush1.bf16.msra.mxu0 %v4581_v48  ;;  %v4610_v48 = vld [vmem:[#allocation3 + $0x7ac] ss:$16 sps:$4 sm:$0xff]  }
 0x421   :  { %2331 = vmatpush2.bf16.msra.mxu1 %v4578_v24  ;;  %2357 = vmatprep.subr.bf16.mxu0 %v4589_v40  ;;  %v4605_v24 = vld [vmem:[#allocation3 + $0x8c8] ss:$16 sps:$4 sm:$0xff]  }
 0x422   :  { %2332 = vmatprep.subr.bf16.mxu1 %v4586_v49  ;;  %v4613_v49 = vld [vmem:[#allocation3 + $0x8ac] ss:$16 sps:$4 sm:$0xff]   ;;  %v4608_v40 = vld [vmem:[#allocation3 + $0x7a8] ss:$16 sps:$4 sm:$0xff]  }
 0x424   :  { %2358 = vmatpush1.bf16.msra.mxu0 %v4587_v60  ;;  %v4616_v60 = vld [vmem:[#allocation3 + $0x78c] ss:$16 sps:$4 sm:$0xff]  }
 0x425   :  { %2333 = vmatpush2.bf16.msra.mxu1 %v4584_v38  ;;  %2359 = vmatprep.subr.bf16.mxu0 %v4595_v54  ;;  %v4611_v38 = vld [vmem:[#allocation3 + $0x8a8] ss:$16 sps:$4 sm:$0xff]  }
 0x426   :  { %2334 = vmatprep.subr.bf16.mxu1 %v4592_v52  ;;  %v4619_v52 = vld [vmem:[#allocation3 + $0x88c] ss:$16 sps:$4 sm:$0xff]   ;;  %v4617_v54 = vld [vmem:[#allocation3 + $0x888] ss:$16 sps:$4 sm:$0xff]  }
 0x428   :  { %2360 = vmatpush1.bf16.msra.mxu0 %v4593_v30  ;;  %v4625_v30 = vld [vmem:[#allocation3 + $0x86c] ss:$16 sps:$4 sm:$0xff]  }
 0x429   :  { %2335 = vmatpush2.bf16.msra.mxu1 %v4590_v29  ;;  %2361 = vmatprep.subr.bf16.mxu0 %v4598_v42  ;;  %v4622_v29 = vld [vmem:[#allocation3 + $0x76c] ss:$16 sps:$4 sm:$0xff]   ;;  %v4620_v42 = vld [vmem:[#allocation3 + $0x768] ss:$16 sps:$4 sm:$0xff]  }
 0x42a   :  { %2386 = vmatprep.subr.bf16.mxu1 %v4601_v57  ;;  %v4628_v57 = vld [vmem:[#allocation3 + $0x74c] ss:$16 sps:$4 sm:$0xff]  }
 0x42c   :  { %2337 = vmatmul.mubr.bf16.vlgmr.msra.gmra.mxu1 %v5267_v56  ;;  %2362 = vmatpush2.bf16.msra.mxu0 %v4596_v44  ;;  %v4614_v56 = vld [vmem:[#allocation3 + $0x788] ss:$16 sps:$4 sm:$0xff]   ;;  %v4631_v44 = vld [vmem:[#allocation3 + $0x84c] ss:$16 sps:$4 sm:$0xff]  }
 0x42d   :  { %2387 = vmatpush1.bf16.msra.mxu1 %v4599_v19  ;;  %2363 = vmatprep.subr.bf16.mxu0 %v4604_v62  ;;  %v4626_v19 = vld [vmem:[#allocation3 + $0x748] ss:$16 sps:$4 sm:$0xff]  }
 0x42e   :  { %2388 = vmatprep.subr.bf16.mxu1 %v4607_v28  ;;  %2418 = vmatprep.mubr.bf16.mxu1 %v5788_v46  ;;  %v4623_v46 = vld [vmem:[#allocation3 + $0x868] ss:$16 sps:$4 sm:$0xff]   ;;  %v4634_v28 = vld [vmem:[#allocation3 + $0x72c] ss:$16 sps:$4 sm:$0xff]  }
 0x42f   :  { %v4629_v62 = vld [vmem:[#allocation3 + $0x848] ss:$16 sps:$4 sm:$0xff]  }
 0x430   :  { %2364 = vmatpush2.bf16.msra.mxu0 %v4602_v36  ;;  %v4637_v36 = vld [vmem:[#allocation3 + $0x82c] ss:$16 sps:$4 sm:$0xff]  }
 0x431   :  { %2389 = vmatpush1.bf16.msra.mxu1 %v4605_v24  ;;  %2365 = vmatprep.subr.bf16.mxu0 %v4610_v48  ;;  %v4632_v24 = vld [vmem:[#allocation3 + $0x728] ss:$16 sps:$4 sm:$0xff]  }
 0x432   :  { %2390 = vmatprep.subr.bf16.mxu1 %v4613_v49  ;;  %v4635_v48 = vld [vmem:[#allocation3 + $0x828] ss:$16 sps:$4 sm:$0xff]   ;;  %v4640_v49 = vld [vmem:[#allocation3 + $0x70c] ss:$16 sps:$4 sm:$0xff]  }
 0x434   :  { %2366 = vmatpush2.bf16.msra.mxu0 %v4608_v40  ;;  %v4643_v40 = vld [vmem:[#allocation3 + $0x80c] ss:$16 sps:$4 sm:$0xff]  }
 0x435   :  { %2391 = vmatpush1.bf16.msra.mxu1 %v4611_v38  ;;  %2367 = vmatprep.subr.bf16.mxu0 %v4616_v60  ;;  %v4638_v38 = vld [vmem:[#allocation3 + $0x708] ss:$16 sps:$4 sm:$0xff]  }
 0x436   :  { %2392 = vmatprep.subr.bf16.mxu1 %v4619_v52  ;;  %v4641_v60 = vld [vmem:[#allocation3 + $0x808] ss:$16 sps:$4 sm:$0xff]   ;;  %v4091_v52 = vcombine.high %v5055_v39, %v5059_v41 }
 0x438   :  { %2368 = vmatpush2.bf16.msra.mxu0 %v4614_v56  ;;  %v4155_v56 = vcombine.high %v5183_v17, %v5187_v21 }
 0x439   :  { %2393 = vmatpush1.bf16.msra.mxu1 %v4617_v54  ;;  %2369 = vmatprep.subr.bf16.mxu0 %v4622_v29  ;;  %v4090_v54 = vcombine.low %v5055_v39, %v5059_v41  ;;  %v4154_v29 = vcombine.low %v5183_v17, %v5187_v21  ;;  %v4086_v39 = vcombine.low %v5047_v35, %v5051_v37 }
 0x43a   :  { %2394 = vmatprep.subr.bf16.mxu1 %v4625_v30  ;;  %v4087_v30 = vcombine.high %v5047_v35, %v5051_v37  ;;  %v4150_v17 = vcombine.low %v5175_v14, %v5179_v15  ;;  %v4083_v21 = vcombine.high %v5039_v31, %v5043_v33  ;;  %v4147_v41 = vcombine.high %v5167_v63, %v5171_v5 }
 0x43b   :  { %v4082_v35 = vcombine.low %v5039_v31, %v5043_v33  ;;  %v4143_v37 = vcombine.high %v5159_v7, %v5163_v12  ;;  %v4074_v31 = vcombine.low %v5023_v6, %v5027_v16  ;;  %v4138_v33 = vcombine.low %v5151_v26, %v5155_v50 }
 0x43c   :  { %2370 = vmatpush2.bf16.msra.mxu0 %v4620_v42  ;;  %v4151_v42 = vcombine.high %v5175_v14, %v5179_v15  ;;  %v4146_v14 = vcombine.low %v5167_v63, %v5171_v5  ;;  %v4079_v15 = vcombine.high %v5031_v20, %v5035_v22  ;;  %v4075_v63 = vcombine.high %v5023_v6, %v5027_v16 }
 0x43d   :  { %2395 = vmatpush1.bf16.msra.mxu1 %v4623_v46  ;;  %2371 = vmatprep.subr.bf16.mxu0 %v4628_v57  ;;  %v4139_v5 = vcombine.high %v5151_v26, %v5155_v50  ;;  %v4067_v26 = vcombine.high %v5007_v10, %v5011_v8  ;;  %v4131_v50 = vcombine.high %v5135_v18, %v5139_v51 }
 0x43e   :  { %2396 = vmatprep.subr.bf16.mxu1 %v4631_v44  ;;  %v4066_v6 = vcombine.low %v5007_v10, %v5011_v8  ;;  %v4130_v16 = vcombine.low %v5135_v18, %v5139_v51  ;;  %v4123_v10 = vcombine.high %v5119_v53, %v5123_v58  ;;  %v4187_v8 = vcombine.high %v5247_v2, %v5251_v9 }
 0x43f   :  { %v4122_v18 = vcombine.low %v5119_v53, %v5123_v58  ;;  %v4186_v51 = vcombine.low %v5247_v2, %v5251_v9  ;;  %v5789_v2 = vld [vmem:[#allocation66_spill] sm:$0xff]  ;;  %v5790_v53 = vld [vmem:[#allocation111_spill] sm:$0xff]  ;;  %v5791_v58 = vld [vmem:[#allocation109_spill] sm:$0xff] }
 0x440   :  { %2372 = vmatpush2.bf16.msra.mxu0 %v4626_v19  ;;  %v4115_v9 = vcombine.high %v5789_v2, %v5107_v23  ;;  %v4179_v46 = vcombine.high %v5791_v58, %v5790_v53  ;;  %v4114_v57 = vcombine.low %v5789_v2, %v5107_v23  ;;  %v4178_v44 = vcombine.low %v5791_v58, %v5790_v53  ;;  %v5795_v19 = vld [vmem:[#allocation105_spill] sm:$0xff]  ;;  %v5796_v23 = vld [vmem:[#allocation60_spill] sm:$0xff] }
 0x441   :  { %2397 = vmatpush1.bf16.msra.mxu1 %v4629_v62  ;;  %2373 = vmatprep.subr.bf16.mxu0 %v4634_v28  ;;  %v5821_v2 = vld [vmem:[#allocation29_spill] sm:$0xff] }
 0x442   :  { %2398 = vmatprep.subr.bf16.mxu1 %v4637_v36  ;;  %v5822_v58 = vld [vmem:[#allocation41_spill] sm:$0xff] }
 0x444   :  { %2374 = vmatpush2.bf16.msra.mxu0 %v4632_v24  ;;  %v5797_v24 = vld [vmem:[#allocation58_spill] sm:$0xff] }
 0x445   :  { %2399 = vmatpush1.bf16.msra.mxu1 %v4635_v48  ;;  %2375 = vmatprep.subr.bf16.mxu0 %v4640_v49  ;;  %v4107_v48 = vcombine.high %v5797_v24, %v5796_v23  ;;  %v5798_v49 = vld [vmem:[#allocation103_spill] sm:$0xff] }
 0x446   :  { %2400 = vmatprep.subr.bf16.mxu1 %v4643_v40  ;;  %v5799_v40 = vld [vmem:[#allocation101_spill] sm:$0xff] }
 0x448   :  { %2376 = vmatpush2.bf16.msra.mxu0 %v4638_v38  ;;  %v4171_v38 = vcombine.high %v5799_v40, %v5798_v49 }
 0x449   :  { %2401 = vmatpush1.bf16.msra.mxu1 %v4641_v60  ;;  %3067 = vmatprep.subr.bf16.mxu0 %v4091_v52  ;;  %v4106_v60 = vcombine.low %v5797_v24, %v5796_v23  ;;  %v4170_v52 = vcombine.low %v5799_v40, %v5798_v49  ;;  %v5829_v23 = vld [vmem:[#allocation81_spill] sm:$0xff]  ;;  %v5831_v49 = vld [vmem:[#allocation36_spill] sm:$0xff] }
 0x44a   :  { %3108 = vmatprep.subr.bf16.mxu1 %v4155_v56  ;;  %v5800_v56 = vld [vmem:[#allocation56_spill] sm:$0xff] }
 0x44b   :  { %2378 = vmatmul.mubr.bf16.vlgmr.msra.gmra.mxu0 %v5271_v43  ;;  %v4078_v43 = vcombine.low %v5031_v20, %v5035_v22  ;;  %v4070_v20 = vcombine.low %v5015_v11, %v5019_v13  ;;  %v4134_v22 = vcombine.low %v5143_v55, %v5147_v61 }
 0x44c   :  { %2419 = vmatmul.mubr.bf16.vlgmr.msra.gmra.mxu1 %v5279_v59  ;;  %3068 = vmatpush1.bf16.msra.mxu0 %v4090_v54  ;;  %v4142_v59 = vcombine.low %v5159_v7, %v5163_v12  ;;  %v4071_v7 = vcombine.high %v5015_v11, %v5019_v13  ;;  %v4135_v12 = vcombine.high %v5143_v55, %v5147_v61  ;;  %v5801_v54 = vld [vmem:[#allocation54_spill] sm:$0xff] }
 0x44d   :  { %3109 = vmatpush1.bf16.msra.mxu1 %v4154_v29  ;;  %3069 = vmatprep.subr.bf16.mxu0 %v4087_v30  ;;  %v4063_v11 = vcombine.high %v4999_v3, %v5003_v4  ;;  %v4127_v13 = vcombine.high %v5127_v0, %v5131_v45  ;;  %v4062_v55 = vcombine.low %v4999_v3, %v5003_v4  ;;  %v5802_v30 = vld [vmem:[#allocation99_spill] sm:$0xff] }
 0x44e   :  { %3110 = vmatprep.subr.bf16.mxu1 %v4151_v42  ;;  %3099 = vmatprep.mubr.bf16.mxu0 %v4993_v1  ;;  %v4126_v61 = vcombine.low %v5127_v0, %v5131_v45  ;;  %v4119_v0 = vcombine.high %v5111_v47, %v5115_v27  ;;  %v4183_v3 = vcombine.high %v5239_v32, %v5243_v34  ;;  %v5803_v42 = vld [vmem:[#allocation97_spill] sm:$0xff] }
 0x44f   :  { %3140 = vmatprep.mubr.bf16.mxu1 %v4997_v25  ;;  %v4118_v4 = vcombine.low %v5111_v47, %v5115_v27  ;;  %v4182_v45 = vcombine.low %v5239_v32, %v5243_v34  ;;  %v5792_v47 = vld [vmem:[#allocation64_spill] sm:$0xff]  ;;  %v5793_v32 = vld [vmem:[#allocation62_spill] sm:$0xff]  ;;  %v5794_v27 = vld [vmem:[#allocation107_spill] sm:$0xff]  ;;  %v4103_v29 = vcombine.high %v5801_v54, %v5800_v56 }
 0x450   :  { %3070 = vmatpush1.bf16.msra.mxu0 %v4086_v39  ;;  %v4111_v34 = vcombine.high %v5793_v32, %v5792_v47  ;;  %v4175_v62 = vcombine.high %v5795_v19, %v5794_v27  ;;  %v4110_v28 = vcombine.low %v5793_v32, %v5792_v47  ;;  %v4174_v36 = vcombine.low %v5795_v19, %v5794_v27  ;;  %v5825_v47 = vld [vmem:[#allocation83_spill] sm:$0xff] }
 0x451   :  { %3111 = vmatpush1.bf16.msra.mxu1 %v4150_v17  ;;  %3071 = vmatprep.subr.bf16.mxu0 %v4083_v21  ;;  %v4167_v39 = vcombine.high %v5803_v42, %v5802_v30  ;;  %v4102_v17 = vcombine.low %v5801_v54, %v5800_v56  ;;  %v4166_v21 = vcombine.low %v5803_v42, %v5802_v30  ;;  %v5826_v19 = vld [vmem:[#allocation39_spill] sm:$0xff]  ;;  %v5835_v30 = vld [vmem:[#allocation34_spill] sm:$0xff] }
 0x452   :  { %3112 = vmatprep.subr.bf16.mxu1 %v4147_v41  ;;  %v5804_v41 = vld [vmem:[#allocation52_spill] sm:$0xff] }
 0x454   :  { %3072 = vmatpush1.bf16.msra.mxu0 %v4082_v35  ;;  %v5805_v35 = vld [vmem:[#allocation50_spill] sm:$0xff] }
 0x455   :  { %3113 = vmatpush1.bf16.msra.mxu1 %v4146_v14  ;;  %3073 = vmatprep.subr.bf16.mxu0 %v4079_v15  ;;  %v4099_v14 = vcombine.high %v5805_v35, %v5804_v41  ;;  %v5806_v15 = vld [vmem:[#allocation95_spill] sm:$0xff] }
 0x456   :  { %3114 = vmatprep.subr.bf16.mxu1 %v4143_v37  ;;  %v5807_v37 = vld [vmem:[#allocation93_spill] sm:$0xff] }
 0x458   :  { %3074 = vmatpush1.bf16.msra.mxu0 %v4078_v43  ;;  %v4163_v43 = vcombine.high %v5807_v37, %v5806_v15 }
 0x459   :  { %3115 = vmatpush1.bf16.msra.mxu1 %v4142_v59  ;;  %3075 = vmatprep.subr.bf16.mxu0 %v4075_v63  ;;  %v4098_v59 = vcombine.low %v5805_v35, %v5804_v41  ;;  %v4162_v63 = vcombine.low %v5807_v37, %v5806_v15  ;;  %v5839_v15 = vld [vmem:[#allocation32_spill] sm:$0xff] }
 0x45a   :  { %3116 = vmatprep.subr.bf16.mxu1 %v4139_v5  ;;  %v5808_v5 = vld [vmem:[#allocation48_spill] sm:$0xff] }
 0x45c   :  { %3076 = vmatpush1.bf16.msra.mxu0 %v4074_v31  ;;  %v5809_v31 = vld [vmem:[#allocation46_spill] sm:$0xff] }
 0x45d   :  { %3117 = vmatpush1.bf16.msra.mxu1 %v4138_v33  ;;  %3077 = vmatprep.subr.bf16.mxu0 %v4071_v7  ;;  %v4095_v33 = vcombine.high %v5809_v31, %v5808_v5  ;;  %v5810_v7 = vld [vmem:[#allocation91_spill] sm:$0xff] }
 0x45e   :  { %3118 = vmatprep.subr.bf16.mxu1 %v4135_v12  ;;  %v5811_v12 = vld [vmem:[#allocation89_spill] sm:$0xff] }
 0x460   :  { %3078 = vmatpush1.bf16.msra.mxu0 %v4070_v20  ;;  %v4159_v20 = vcombine.high %v5811_v12, %v5810_v7 }
 0x461   :  { %3119 = vmatpush1.bf16.msra.mxu1 %v4134_v22  ;;  %3079 = vmatprep.subr.bf16.mxu0 %v4067_v26  ;;  %v4094_v22 = vcombine.low %v5809_v31, %v5808_v5  ;;  %v4158_v26 = vcombine.low %v5811_v12, %v5810_v7  ;;  %v5843_v7 = vld [vmem:[#allocation30_spill] sm:$0xff] }
 0x462   :  { %3120 = vmatprep.subr.bf16.mxu1 %v4131_v50  ;;  %v5812_v50 = vld [vmem:[#allocation45_spill] sm:$0xff] }
 0x464   :  { %3080 = vmatpush1.bf16.msra.mxu0 %v4066_v6  ;;  %v5813_v6 = vld [vmem:[#allocation44_spill] sm:$0xff] }
 0x465   :  { %3121 = vmatpush1.bf16.msra.mxu1 %v4130_v16  ;;  %3081 = vmatprep.subr.bf16.mxu0 %v4063_v11  ;;  %v4093_v16 = vcombine.high %v5813_v6, %v5812_v50  ;;  %v5814_v11 = vld [vmem:[#allocation88_spill] sm:$0xff] }
 0x466   :  { %3122 = vmatprep.subr.bf16.mxu1 %v4127_v13  ;;  %v5815_v13 = vld [vmem:[#allocation87_spill] sm:$0xff] }
 0x468   :  { %3082 = vmatpush1.bf16.msra.mxu0 %v4062_v55  ;;  %v4157_v55 = vcombine.high %v5815_v13, %v5814_v11 }
 0x469   :  { %3123 = vmatpush1.bf16.msra.mxu1 %v4126_v61  ;;  %3083 = vmatprep.subr.bf16.mxu0 %v4123_v10  ;;  %v4092_v61 = vcombine.low %v5813_v6, %v5812_v50  ;;  %v4156_v10 = vcombine.low %v5815_v13, %v5814_v11  ;;  %v5847_v11 = vld [vmem:[#allocation71_spill] sm:$0xff] }
 0x46a   :  { %3124 = vmatprep.subr.bf16.mxu1 %v4187_v8  ;;  %v5816_v8 = vld [vmem:[#allocation43_spill] sm:$0xff] }
 0x46c   :  { %3084 = vmatpush2.bf16.msra.mxu0 %v4122_v18  ;;  %v5817_v18 = vld [vmem:[#allocation42_spill] sm:$0xff] }
 0x46d   :  { %3125 = vmatpush2.bf16.msra.mxu1 %v4186_v51  ;;  %3085 = vmatprep.subr.bf16.mxu0 %v4119_v0  ;;  %v4089_v51 = vcombine.high %v5817_v18, %v5816_v8  ;;  %v5818_v0 = vld [vmem:[#allocation86_spill] sm:$0xff] }
 0x46e   :  { %3126 = vmatprep.subr.bf16.mxu1 %v4183_v3  ;;  %v5819_v3 = vld [vmem:[#allocation85_spill] sm:$0xff] }
 0x46f   :  { %v4152_v53 = vcombine.low %v5819_v3, %v5818_v0 }
 0x470   :  { %3086 = vmatpush2.bf16.msra.mxu0 %v4118_v4  ;;  %v4153_v4 = vcombine.high %v5819_v3, %v5818_v0  ;;  %v5851_v0 = vld [vmem:[#allocation69_spill] sm:$0xff] }
 0x471   :  { %3127 = vmatpush2.bf16.msra.mxu1 %v4182_v45  ;;  %3087 = vmatprep.subr.bf16.mxu0 %v4115_v9  ;;  %v5820_v45 = vld [vmem:[#allocation28_spill] sm:$0xff]  ;;  %v4088_v9 = vcombine.low %v5817_v18, %v5816_v8 }
 0x472   :  { %3128 = vmatprep.subr.bf16.mxu1 %v4179_v46  ;;  %v5823_v46 = vld [vmem:[#allocation40_spill] sm:$0xff] }
 0x474   :  { %3088 = vmatpush2.bf16.msra.mxu0 %v4114_v57  ;;  %v4085_v57 = vcombine.high %v5823_v46, %v5822_v58 }
 0x475   :  { %3129 = vmatpush2.bf16.msra.mxu1 %v4178_v44  ;;  %3089 = vmatprep.subr.bf16.mxu0 %v4111_v34  ;;  %v5824_v44 = vld [vmem:[#allocation84_spill] sm:$0xff]  ;;  %v4084_v34 = vcombine.low %v5823_v46, %v5822_v58 }
 0x476   :  { %3130 = vmatprep.subr.bf16.mxu1 %v4175_v62  ;;  %v4149_v32 = vcombine.high %v5825_v47, %v5824_v44  ;;  %v4148_v27 = vcombine.low %v5825_v47, %v5824_v44  ;;  %v5827_v62 = vld [vmem:[#allocation38_spill] sm:$0xff] }
 0x478   :  { %3090 = vmatpush2.bf16.msra.mxu0 %v4110_v28  ;;  %v4081_v28 = vcombine.high %v5827_v62, %v5826_v19 }
 0x479   :  { %3131 = vmatpush2.bf16.msra.mxu1 %v4174_v36  ;;  %3091 = vmatprep.subr.bf16.mxu0 %v4107_v48  ;;  %v5828_v36 = vld [vmem:[#allocation82_spill] sm:$0xff]  ;;  %v5830_v48 = vld [vmem:[#allocation37_spill] sm:$0xff] }
 0x47a   :  { %3132 = vmatprep.subr.bf16.mxu1 %v4171_v38  ;;  %v4145_v24 = vcombine.high %v5829_v23, %v5828_v36  ;;  %v4077_v40 = vcombine.high %v5831_v49, %v5830_v48  ;;  %v5832_v38 = vld [vmem:[#allocation80_spill] sm:$0xff]  ;;  %v4076_v56 = vcombine.low %v5831_v49, %v5830_v48 }
 0x47c   :  { %3092 = vmatpush2.bf16.msra.mxu0 %v4106_v60  ;;  %v5833_v60 = vld [vmem:[#allocation79_spill] sm:$0xff] }
 0x47d   :  { %3133 = vmatpush2.bf16.msra.mxu1 %v4170_v52  ;;  %3093 = vmatprep.subr.bf16.mxu0 %v4103_v29  ;;  %v4141_v52 = vcombine.high %v5833_v60, %v5832_v38  ;;  %v4140_v54 = vcombine.low %v5833_v60, %v5832_v38  ;;  %v5834_v29 = vld [vmem:[#allocation35_spill] sm:$0xff]  ;;  %v5858_v60 = vld [vmem:[#allocation65_spill] sm:$0xff] }
 0x47e   :  { %3134 = vmatprep.subr.bf16.mxu1 %v4167_v39  ;;  %v4073_v42 = vcombine.high %v5835_v30, %v5834_v29  ;;  %v5836_v39 = vld [vmem:[#allocation78_spill] sm:$0xff]  ;;  %v4072_v41 = vcombine.low %v5835_v30, %v5834_v29 }
 0x47f   :  { %v5861_v29 = vld [vmem:[#allocation106_spill] sm:$0xff] }
 0x480   :  { %3094 = vmatpush2.bf16.msra.mxu0 %v4102_v17  ;;  %v5837_v17 = vld [vmem:[#allocation77_spill] sm:$0xff] }
 0x481   :  { %3135 = vmatpush2.bf16.msra.mxu1 %v4166_v21  ;;  %3095 = vmatprep.subr.bf16.mxu0 %v4099_v14  ;;  %v4137_v21 = vcombine.high %v5837_v17, %v5836_v39  ;;  %v4136_v35 = vcombine.low %v5837_v17, %v5836_v39  ;;  %v5838_v14 = vld [vmem:[#allocation33_spill] sm:$0xff] }
 0x482   :  { %3136 = vmatprep.subr.bf16.mxu1 %v4163_v43  ;;  %v4069_v37 = vcombine.high %v5839_v15, %v5838_v14  ;;  %v5840_v43 = vld [vmem:[#allocation76_spill] sm:$0xff]  ;;  %v4068_v5 = vcombine.low %v5839_v15, %v5838_v14  ;;  %v5862_v17 = vld [vmem:[#allocation61_spill] sm:$0xff]  ;;  %v5865_v14 = vld [vmem:[#allocation102_spill] sm:$0xff] }
 0x484   :  { %3096 = vmatpush2.bf16.msra.mxu0 %v4098_v59  ;;  %v5841_v59 = vld [vmem:[#allocation75_spill] sm:$0xff] }
 0x485   :  { %3137 = vmatpush2.bf16.msra.mxu1 %v4162_v63  ;;  %3097 = vmatprep.subr.bf16.mxu0 %v4095_v33  ;;  %v4133_v63 = vcombine.high %v5841_v59, %v5840_v43  ;;  %v4132_v31 = vcombine.low %v5841_v59, %v5840_v43  ;;  %v5842_v33 = vld [vmem:[#allocation31_spill] sm:$0xff]  ;;  %v5866_v59 = vld [vmem:[#allocation57_spill] sm:$0xff] }
 0x486   :  { %3138 = vmatprep.subr.bf16.mxu1 %v4159_v20  ;;  %v4065_v12 = vcombine.high %v5843_v7, %v5842_v33  ;;  %v5844_v20 = vld [vmem:[#allocation74_spill] sm:$0xff]  ;;  %v4064_v50 = vcombine.low %v5843_v7, %v5842_v33 }
 0x487   :  { %v5869_v33 = vld [vmem:[#allocation98_spill] sm:$0xff] }
 0x488   :  { %3098 = vmatpush2.bf16.msra.mxu0 %v4094_v22  ;;  %v5845_v22 = vld [vmem:[#allocation73_spill] sm:$0xff] }
 0x489   :  { %3139 = vmatpush2.bf16.msra.mxu1 %v4158_v26  ;;  %3149 = vmatprep.subr.bf16.mxu0 %v4093_v16  ;;  %v4129_v26 = vcombine.high %v5845_v22, %v5844_v20  ;;  %v4128_v6 = vcombine.low %v5845_v22, %v5844_v20  ;;  %v5846_v16 = vld [vmem:[#allocation72_spill] sm:$0xff]  ;;  %v5870_v22 = vld [vmem:[#allocation53_spill] sm:$0xff] }
 0x48a   :  { %3190 = vmatprep.subr.bf16.mxu1 %v4157_v55  ;;  %v4125_v13 = vcombine.high %v5847_v11, %v5846_v16  ;;  %v5848_v55 = vld [vmem:[#allocation116_spill] sm:$0xff]  ;;  %v4124_v8 = vcombine.low %v5847_v11, %v5846_v16  ;;  %v5873_v16 = vld [vmem:[#allocation94_spill] sm:$0xff] }
 0x48b   :  { %3100 = vmatmul.mubr.bf16.vlgmr.msra.gmra.mxu0 %v5820_v45 }
 0x48c   :  { %3141 = vmatmul.mubr.bf16.vlgmr.msra.gmra.mxu1 %v5821_v2  ;;  %3150 = vmatpush1.bf16.msra.mxu0 %v4092_v61  ;;  %v5849_v61 = vld [vmem:[#allocation115_spill] sm:$0xff] }
 0x48d   :  { %3191 = vmatpush1.bf16.msra.mxu1 %v4156_v10  ;;  %3151 = vmatprep.subr.bf16.mxu0 %v4089_v51  ;;  %v4189_v10 = vcombine.high %v5849_v61, %v5848_v55  ;;  %v4188_v18 = vcombine.low %v5849_v61, %v5848_v55  ;;  %v5850_v51 = vld [vmem:[#allocation70_spill] sm:$0xff]  ;;  %v5874_v61 = vld [vmem:[#allocation49_spill] sm:$0xff] }
 0x48e   :  { %3192 = vmatprep.subr.bf16.mxu1 %v4153_v4  ;;  %3181 = vmatprep.mubr.bf16.mxu0 %v4993_v1  ;;  %v4080_v1 = vcombine.low %v5827_v62, %v5826_v19  ;;  %v4121_v3 = vcombine.high %v5851_v0, %v5850_v51  ;;  %v5852_v4 = vld [vmem:[#allocation114_spill] sm:$0xff]  ;;  %v4120_v44 = vcombine.low %v5851_v0, %v5850_v51  ;;  %v5855_v19 = vld [vmem:[#allocation67_spill] sm:$0xff] }
 0x48f   :  { %3222 = vmatprep.mubr.bf16.mxu1 %v4997_v25  ;;  %v4144_v25 = vcombine.low %v5829_v23, %v5828_v36  ;;  %v5857_v36 = vld [vmem:[#allocation110_spill] sm:$0xff] }
 0x490   :  { %3152 = vmatpush1.bf16.msra.mxu0 %v4088_v9  ;;  %v5853_v9 = vld [vmem:[#allocation113_spill] sm:$0xff]  ;;  %v5877_v51 = vld [vmem:[#allocation90_spill] sm:$0xff] }
 0x491   :  { %3193 = vmatpush1.bf16.msra.mxu1 %v4152_v53  ;;  %3153 = vmatprep.subr.bf16.mxu0 %v4085_v57  ;;  %v4185_v53 = vcombine.high %v5853_v9, %v5852_v4  ;;  %v4184_v47 = vcombine.low %v5853_v9, %v5852_v4  ;;  %v4646_v9 = vld [vmem:[#allocation3 + $0x984] ss:$16 sps:$4 sm:$0xff]  }
 0x492   :  { %3194 = vmatprep.subr.bf16.mxu1 %v4149_v32 }
 0x494   :  { %3154 = vmatpush1.bf16.msra.mxu0 %v4084_v34 }
 0x495   :  { %3195 = vmatpush1.bf16.msra.mxu1 %v4148_v27  ;;  %3155 = vmatprep.subr.bf16.mxu0 %v4081_v28  ;;  %v5854_v27 = vld [vmem:[#allocation68_spill] sm:$0xff] }
 0x496   :  { %3196 = vmatprep.subr.bf16.mxu1 %v4145_v24  ;;  %v4117_v62 = vcombine.high %v5855_v19, %v5854_v27  ;;  %v5856_v28 = vld [vmem:[#allocation112_spill] sm:$0xff]  ;;  %v4116_v48 = vcombine.low %v5855_v19, %v5854_v27  ;;  %v4647_v27 = vld [vmem:[#allocation3 + $0x960] ss:$16 sps:$4 sm:$0xff]  }
 0x497   :  { %v4181_v23 = vcombine.high %v5857_v36, %v5856_v28  ;;  %v4180_v49 = vcombine.low %v5857_v36, %v5856_v28  ;;  %v4650_v28 = vld [vmem:[#allocation3 + $0x940] ss:$16 sps:$4 sm:$0xff]   ;;  %v4655_v36 = vld [vmem:[#allocation3 + $0x924] ss:$16 sps:$4 sm:$0xff]  }
 0x498   :  { %3156 = vmatpush1.bf16.msra.mxu0 %v4080_v1 }
 0x499   :  { %3197 = vmatpush1.bf16.msra.mxu1 %v4144_v25  ;;  %3157 = vmatprep.subr.bf16.mxu0 %v4077_v40 }
 0x49a   :  { %3198 = vmatprep.subr.bf16.mxu1 %v4141_v52  ;;  %v5859_v52 = vld [vmem:[#allocation63_spill] sm:$0xff] }
 0x49c   :  { %3158 = vmatpush1.bf16.msra.mxu0 %v4076_v56  ;;  %v4113_v56 = vcombine.high %v5859_v52, %v5858_v60 }
 0x49d   :  { %3199 = vmatpush1.bf16.msra.mxu1 %v4140_v54  ;;  %3159 = vmatprep.subr.bf16.mxu0 %v4073_v42  ;;  %v5860_v54 = vld [vmem:[#allocation108_spill] sm:$0xff]  ;;  %v4112_v42 = vcombine.low %v5859_v52, %v5858_v60 }
 0x49e   :  { %3200 = vmatprep.subr.bf16.mxu1 %v4137_v21  ;;  %v4177_v30 = vcombine.high %v5861_v29, %v5860_v54  ;;  %v4176_v39 = vcombine.low %v5861_v29, %v5860_v54  ;;  %v5863_v21 = vld [vmem:[#allocation59_spill] sm:$0xff] }
 0x4a0   :  { %3160 = vmatpush1.bf16.msra.mxu0 %v4072_v41  ;;  %v4109_v41 = vcombine.high %v5863_v21, %v5862_v17 }
 0x4a1   :  { %3201 = vmatpush1.bf16.msra.mxu1 %v4136_v35  ;;  %3161 = vmatprep.subr.bf16.mxu0 %v4069_v37  ;;  %v5864_v35 = vld [vmem:[#allocation104_spill] sm:$0xff]  ;;  %v4108_v37 = vcombine.low %v5863_v21, %v5862_v17 }
 0x4a2   :  { %3202 = vmatprep.subr.bf16.mxu1 %v4133_v63  ;;  %v4173_v15 = vcombine.high %v5865_v14, %v5864_v35  ;;  %v4172_v43 = vcombine.low %v5865_v14, %v5864_v35  ;;  %v5867_v63 = vld [vmem:[#allocation55_spill] sm:$0xff]  ;;  %v4665_v14 = vld [vmem:[#allocation3 + $0x928] ss:$16 sps:$4 sm:$0xff]  }
 0x4a4   :  { %3162 = vmatpush1.bf16.msra.mxu0 %v4068_v5  ;;  %v4105_v5 = vcombine.high %v5867_v63, %v5866_v59 }
 0x4a5   :  { %3203 = vmatpush1.bf16.msra.mxu1 %v4132_v31  ;;  %3163 = vmatprep.subr.bf16.mxu0 %v4065_v12  ;;  %v5868_v31 = vld [vmem:[#allocation100_spill] sm:$0xff]  ;;  %v4104_v12 = vcombine.low %v5867_v63, %v5866_v59  ;;  %v3447_v59 = vld [vmem:[#allocation10] sm:$0xff] }
 0x4a6   :  { %3204 = vmatprep.subr.bf16.mxu1 %v4129_v26  ;;  %v4169_v7 = vcombine.high %v5869_v33, %v5868_v31  ;;  %v4168_v20 = vcombine.low %v5869_v33, %v5868_v31  ;;  %v5871_v26 = vld [vmem:[#allocation51_spill] sm:$0xff]  ;;  %v3231_v63 = vld [vmem:[#allocation3 + $0x900] sm:$0x11] }
 0x4a7   :  { %v3234_v31 = vunpack.c.h.bf16 %v3231_v63 }
 0x4a8   :  { %3164 = vmatpush1.bf16.msra.mxu0 %v4064_v50  ;;  %v4101_v50 = vcombine.high %v5871_v26, %v5870_v22 }
 0x4a9   :  { %3205 = vmatpush1.bf16.msra.mxu1 %v4128_v6  ;;  %3165 = vmatprep.subr.bf16.mxu0 %v4125_v13  ;;  %v5872_v6 = vld [vmem:[#allocation96_spill] sm:$0xff]  ;;  %v4100_v13 = vcombine.low %v5871_v26, %v5870_v22 }
 0x4aa   :  { %3206 = vmatprep.subr.bf16.mxu1 %v4189_v10  ;;  %v4165_v11 = vcombine.high %v5873_v16, %v5872_v6  ;;  %v4164_v55 = vcombine.low %v5873_v16, %v5872_v6  ;;  %v5875_v10 = vld [vmem:[#allocation47_spill] sm:$0xff] }
 0x4ab   :  { %v2215_v58 = vpop.f32.mrf.mxu0 }
 0x4ac   :  { %v2256_v46 = vpop.f32.mrf.mxu1  ;;  %3166 = vmatpush2.bf16.msra.mxu0 %v4124_v8  ;;  %v4097_v8 = vcombine.high %v5875_v10, %v5874_v61 }
 0x4ad   :  { %v5497_v57 = vadd.f32 %v2256_v46, %v2215_v58  ;;  %3207 = vmatpush2.bf16.msra.mxu1 %v4188_v18  ;;  %v2217_v32 = vpop.f32.mrf.mxu0  ;;  %3167 = vmatprep.subr.bf16.mxu0 %v4121_v3  ;;  %v5876_v18 = vld [vmem:[#allocation92_spill] sm:$0xff]  ;;  %v4096_v3 = vcombine.low %v5875_v10, %v5874_v61 }
 0x4ae   :  { %v2258_v34 = vpop.f32.mrf.mxu1  ;;  %3208 = vmatprep.subr.bf16.mxu1 %v4185_v53  ;;  %v4161_v0 = vcombine.high %v5877_v51, %v5876_v18  ;;  %v4160_v4 = vcombine.low %v5877_v51, %v5876_v18  ;;  %v4644_v53 = vld [vmem:[#allocation3 + $0x980] ss:$16 sps:$4 sm:$0xff]   ;;  %v4649_v58 = vld [vmem:[#allocation3 + $0x964] ss:$16 sps:$4 sm:$0xff]  }
 0x4af   :  { %v5507_v24 = vadd.f32 %v2258_v34, %v2217_v32  ;;  %v2219_v1 = vpop.f32.mrf.mxu0 }
 0x4b0   :  { %v2260_v25 = vpop.f32.mrf.mxu1  ;;  %3168 = vmatpush2.bf16.msra.mxu0 %v4120_v44  ;;  %v4658_v1 = vld [vmem:[#allocation3 + $0x98c] ss:$16 sps:$4 sm:$0xff]  }
 0x4b1   :  { %3209 = vmatpush2.bf16.msra.mxu1 %v4184_v47  ;;  %v2220_v40 = vpop.f32.mrf.mxu0  ;;  %3169 = vmatprep.subr.bf16.mxu0 %v4117_v62  ;;  %v4652_v62 = vld [vmem:[#allocation3 + $0x944] ss:$16 sps:$4 sm:$0xff]   ;;  %v4664_v25 = vld [vmem:[#allocation3 + $0x94c] ss:$16 sps:$4 sm:$0xff]  }
 0x4b2   :  { %v2261_v38 = vpop.f32.mrf.mxu1  ;;  %3210 = vmatprep.subr.bf16.mxu1 %v4181_v23  ;;  %v4656_v23 = vld [vmem:[#allocation3 + $0x988] ss:$16 sps:$4 sm:$0xff]  }
 0x4b4   :  { %3170 = vmatpush2.bf16.msra.mxu0 %v4116_v48  ;;  %v4662_v48 = vld [vmem:[#allocation3 + $0x948] ss:$16 sps:$4 sm:$0xff]  }
 0x4b5   :  { %3211 = vmatpush2.bf16.msra.mxu1 %v4180_v49  ;;  %3171 = vmatprep.subr.bf16.mxu0 %v4113_v56 }
 0x4b6   :  { %3212 = vmatprep.subr.bf16.mxu1 %v4177_v30 }
 0x4b8   :  { %3172 = vmatpush2.bf16.msra.mxu0 %v4112_v42 }
 0x4b9   :  { %3213 = vmatpush2.bf16.msra.mxu1 %v4176_v39  ;;  %3173 = vmatprep.subr.bf16.mxu0 %v4109_v41  ;;  %v4667_v41 = vld [vmem:[#allocation3 + $0x92c] ss:$16 sps:$4 sm:$0xff]  }
 0x4ba   :  { %3214 = vmatprep.subr.bf16.mxu1 %v4173_v15 }
 0x4bc   :  { %3174 = vmatpush2.bf16.msra.mxu0 %v4108_v37 }
 0x4bd   :  { %3215 = vmatpush2.bf16.msra.mxu1 %v4172_v43  ;;  %3175 = vmatprep.subr.bf16.mxu0 %v4105_v5  ;;  %v3448_v43 = vld [vmem:[#allocation10 + $0x8] sm:$0xf]  ;;  %v3233_v5 = vunpack.c.l.bf16 %v3231_v63 }
 0x4be   :  { %3216 = vmatprep.subr.bf16.mxu1 %v4169_v7  ;;  %3535 = vrot.lane.b32.xlu0 %v3448_v43, %s4836_s4 }
 0x4c0   :  { %3176 = vmatpush2.bf16.msra.mxu0 %v4104_v12 }
 0x4c1   :  { %3217 = vmatpush2.bf16.msra.mxu1 %v4168_v20  ;;  %3177 = vmatprep.subr.bf16.mxu0 %v4101_v50  ;;  %v5879_v20 = vld [vmem:[#allocation27_spill] sm:$0xff] }
 0x4c2   :  { %3218 = vmatprep.subr.bf16.mxu1 %v4165_v11  ;;  %3533 = vrot.lane.b32.xlu0 %v3447_v59, %s4836_s4  ;;  %v3240_v22 = vrot.slane %v3233_v5, %v5879_v20  ;;  %v3244_v11 = vrot.slane %v3234_v31, %v5879_v20  ;;  %v4190_v5 = vld [vmem:[#allocation10 + $0x7b] ss:$0 sm:$0xff] }
 0x4c4   :  { %3178 = vmatpush2.bf16.msra.mxu0 %v4100_v13 }
 0x4c5   :  { %3219 = vmatpush2.bf16.msra.mxu1 %v4164_v55  ;;  %3179 = vmatprep.subr.bf16.mxu0 %v4097_v8 }
 0x4c6   :  { %3220 = vmatprep.subr.bf16.mxu1 %v4161_v0 }
 0x4c8   :  { %3180 = vmatpush2.bf16.msra.mxu0 %v4096_v3 }
 0x4c9   :  { %3221 = vmatpush2.bf16.msra.mxu1 %v4160_v4  ;;  %3374 = vmatprep.subr.bf16.mxu0 %v4646_v9 }
 0x4ca   :  { %3414 = vmatprep.subr.bf16.mxu1 %v4658_v1 }
 0x4cb   :  { %v2297_v46 = vpop.f32.mrf.mxu0  ;;  %3182 = vmatmul.mubr.bf16.vlgmr.msra.gmra.mxu0 %v5820_v45  ;;  %v4661_v45 = vld [vmem:[#allocation3 + $0x96c] ss:$16 sps:$4 sm:$0xff]  }
 0x4cc   :  { %3223 = vmatmul.mubr.bf16.vlgmr.msra.gmra.mxu1 %v5821_v2  ;;  %v2298_v44 = vadd.f32 %v2297_v46, %v5497_v57  ;;  %3375 = vmatpush1.bf16.xpose.msra.mxu0 %v4644_v53  ;;  %v4653_v2 = vld [vmem:[#allocation3 + $0x920] ss:$16 sps:$4 sm:$0xff]   ;;  %v4659_v57 = vld [vmem:[#allocation3 + $0x968] ss:$16 sps:$4 sm:$0xff]  }
 0x4cd   :  { %v2299_v47 = vpop.f32.mrf.mxu0  ;;  %3376 = vmatprep.subr.bf16.mxu0 %v4649_v58  ;;  %3415 = vmatpush1.bf16.xpose.msra.mxu1 %v4656_v23  ;;  %v3232_v53 = vld [vmem:[#allocation3 + $0x908] sm:$0x11] }
 0x4ce   :  { %v2300_v32 = vadd.f32 %v2299_v47, %v5507_v24  ;;  %3416 = vmatprep.subr.bf16.mxu1 %v4661_v45  ;;  %v5878_v24 = vmov 0.0   ;;  %v3235_v58 = vunpack.c.l.bf16 %v3232_v53  ;;  %v3236_v46 = vunpack.c.h.bf16 %v3232_v53  ;;  %v4211_v53 = vld [vmem:[#allocation10 + $0x7d] ss:$0 sm:$0xff] }
 0x4cf   :  { %v2301_v34 = vpop.f32.mrf.mxu0 }
 0x4d0   :  { %v3248_v34 = vrot.slane %v3235_v58, %v5879_v20 }
 0x4d1   :  { %v2302_v19 = vpop.f32.mrf.mxu0 }
 0x4d4   :  { %3377 = vmatpush1.bf16.xpose.msra.mxu0 %v4647_v27 }
 0x4d5   :  { %3378 = vmatprep.subr.bf16.mxu0 %v4652_v62  ;;  %3417 = vmatpush1.bf16.xpose.msra.mxu1 %v4659_v57 }
 0x4d6   :  { %3418 = vmatprep.subr.bf16.mxu1 %v4664_v25 }
 0x4dc   :  { %3379 = vmatpush1.bf16.xpose.msra.mxu0 %v4650_v28 }
 0x4dd   :  { %3380 = vmatprep.subr.bf16.mxu0 %v4655_v36  ;;  %3419 = vmatpush1.bf16.xpose.msra.mxu1 %v4662_v48  ;;  %v3252_v36 = vrot.slane %v3236_v46, %v5879_v20 }
 0x4de   :  { %3420 = vmatprep.subr.bf16.mxu1 %v4667_v41  ;;  %v5880_v41 = vld [vmem:[#allocation26_spill] sm:$0xff] }
 0x4e4   :  { %3381 = vmatpush1.bf16.xpose.msra.mxu0 %v4653_v2 }
 0x4e5   :  { %4286 = vmatprep.subr.mxu0 %v5878_v24  ;;  %3421 = vmatpush1.bf16.xpose.msra.mxu1 %v4665_v14  ;;  %v3449_v14 = vld [vmem:[#allocation10 + $0x20] sm:$0xff] }
 0x4e6   :  { %4305 = vmatprep.subr.mxu1 %v5878_v24 }
 0x4ec   :  { %v2338_v49 = vpop.f32.mrf.mxu1 }
 0x4ee   :  { %v2340_v40 = vpop.f32.mrf.mxu1 }
 0x4f0   :  { %v2342_v38 = vpop.f32.mrf.mxu1 }
 0x4f2   :  { %v2343_v60 = vpop.f32.mrf.mxu1 }
 0x50b   :  { %v2379_v52 = vpop.f32.mrf.mxu0 }
 0x50c   :  { %v2420_v56 = vpop.f32.mrf.mxu1  ;;  %v2380_v54 = vadd.f32 %v2379_v52, %v2338_v49  ;;  %v3456_v52 = vld [vmem:[#allocation10 + $0x58] sm:$0xff] }
 0x50d   :  { %v2381_v29 = vpop.f32.mrf.mxu0 }
 0x50e   :  { %v2422_v30 = vpop.f32.mrf.mxu1  ;;  %v2421_v42 = vadd.f32 %v2420_v56, %v2380_v54  ;;  %v2382_v39 = vadd.f32 %v2381_v29, %v2340_v40  ;;  %v3455_v56 = vld [vmem:[#allocation10 + $0x50] sm:$0xff]  ;;  %v3454_v29 = vld [vmem:[#allocation10 + $0x48] sm:$0xff] }
 0x50f   :  { %v2383_v17 = vpop.f32.mrf.mxu0 }
 0x510   :  { %v2424_v21 = vpop.f32.mrf.mxu1  ;;  %v2423_v35 = vadd.f32 %v2422_v30, %v2382_v39  ;;  %v3453_v30 = vld [vmem:[#allocation10 + $0x40] sm:$0xff]  ;;  %v3452_v39 = vld [vmem:[#allocation10 + $0x38] sm:$0xff]  ;;  %v3451_v17 = vld [vmem:[#allocation10 + $0x30] sm:$0xff] }
 0x511   :  { %v2384_v15 = vpop.f32.mrf.mxu0  ;;  %v3450_v21 = vld [vmem:[#allocation10 + $0x28] sm:$0xff]  ;;  %3644 = vrot.lane.b32.xlu1 %v3453_v30, %s4837_s25  ;;  %3640 = vrot.lane.b32.xlu0 %v3451_v17, %s4837_s25 }
 0x512   :  { %v2425_v37 = vpop.f32.mrf.mxu1 }
 0x515   :  { %3642 = vrot.lane.b32.xlu1 %v3452_v39, %s4837_s25  ;;  %3636 = vrot.lane.b32.xlu0 %v3449_v14, %s4837_s25 }
 0x519   :  { %3638 = vrot.lane.b32.xlu1 %v3450_v21, %s4837_s25 }
 0x530   :  { %v3536_v54 = vpop.permute.xlu0 %3535 }
 0x54b   :  { %v3101_v33 = vpop.f32.mrf.mxu0 }
 0x54c   :  { %v3142_v7 = vpop.f32.mrf.mxu1  ;;  %v3102_v12 = vadd.f32 %v3101_v33, %v2298_v44 }
 0x54d   :  { %v3103_v26 = vpop.f32.mrf.mxu0 }
 0x54e   :  { %v3144_v50 = vpop.f32.mrf.mxu1  ;;  %v3143_v6 = vadd.f32 %v3142_v7, %v3102_v12  ;;  %v3104_v16 = vadd.f32 %v3103_v26, %v2300_v32 }
 0x54f   :  { %v3105_v13 = vpop.f32.mrf.mxu0 }
 0x550   :  { %v3146_v55 = vpop.f32.mrf.mxu1  ;;  %v3253_v61 = vadd.f32 %v3240_v22, %v3143_v6  ;;  %v3145_v10 = vadd.f32 %v3144_v50, %v3104_v16 }
 0x551   :  { %v3106_v8 = vpop.f32.mrf.mxu0 }
 0x552   :  { %v3147_v18 = vpop.f32.mrf.mxu1  ;;  %v3254_v51 = vadd.f32 %v3244_v11, %v3145_v10  ;;  %v3257_v0 = vmax.f32 %v3253_v61, 0.0  ;;  %v4210_v10 = vld [vmem:[#allocation10 + $0x7c] ss:$0 sm:$0xff] }
 0x554   :  { %v3258_v3 = vmax.f32 %v3254_v51, 0.0  ;;  %v3277_v9 = vpack.c.bf16 %v3257_v0, %v3257_v0 }
 0x556   :  { %v3278_v4 = vpack.c.bf16 %v3258_v3, %v3258_v3  ;;  %v3728_v3 = vld [vmem:[#allocation10 + $0x70] sm:$0xf] }
 0x558   :  { %3398 = vmatprep.mubr.bf16.mxu0 %v3278_v4  ;;  %v3727_v4 = vld [vmem:[#allocation10 + $0x68] sm:$0xff] }
 0x559   :  { %3399 = vmatmul.mubr.bf16.vlgmr.msra.gmra.mxu0 %v3277_v9  ;;  %v3726_v9 = vld [vmem:[#allocation10 + $0x60] sm:$0xff] }
 0x55a   :  { %4302 = vmatprep.mubr.msk.f32.mxu0 %vm4829_vm0, %v5878_v24  ;;  %4287 = vmatpush3.msra.mxu0 %v3456_v52 }
 0x55b   :  { %4288 = vmatprep.subr.mxu0 %v5878_v24 }
 0x55c   :  { %4289 = vmatpush3.msra.mxu0 %v3455_v56 }
 0x55d   :  { %4290 = vmatprep.subr.mxu0 %v5878_v24 }
 0x55e   :  { %4291 = vmatpush3.msra.mxu0 %v3454_v29 }
 0x55f   :  { %4292 = vmatprep.subr.mxu0 %v5878_v24 }
 0x560   :  { %4293 = vmatpush3.msra.mxu0 %v3453_v30 }
 0x561   :  { %4294 = vmatprep.subr.mxu0 %v5878_v24 }
 0x562   :  { %4295 = vmatpush3.msra.mxu0 %v3452_v39 }
 0x563   :  { %4296 = vmatprep.subr.mxu0 %v5878_v24 }
 0x564   :  { %4297 = vmatpush3.msra.mxu0 %v3451_v17 }
 0x565   :  { %4298 = vmatprep.subr.mxu0 %v5878_v24 }
 0x566   :  { %4299 = vmatpush3.msra.mxu0 %v3450_v21 }
 0x567   :  { %4300 = vmatprep.subr.mxu0 %v5878_v24 }
 0x568   :  { %4301 = vmatpush3.msra.mxu0 %v3449_v14 }
 0x569   :  { %4325 = vmatprep.subr.mxu0 %v5878_v24 }
 0x583   :  { %v3645_v63 = vpop.permute.xlu1 %3644 }
 0x587   :  { %v3643_v31 = vpop.permute.xlu1 %3642 }
 0x58b   :  { %v3183_v44 = vpop.f32.mrf.mxu0  ;;  %v3639_v13 = vpop.permute.xlu1 %3638 }
 0x58c   :  { %v3224_v47 = vpop.f32.mrf.mxu1  ;;  %v3184_v32 = vadd.f32 %v3183_v44, %v2421_v42  ;;  %v3534_v42 = vpop.permute.xlu0 %3533 }
 0x58d   :  { %v3185_v27 = vpop.f32.mrf.mxu0 }
 0x58e   :  { %v3226_v19 = vpop.f32.mrf.mxu1  ;;  %v3225_v62 = vadd.f32 %v3224_v47, %v3184_v32  ;;  %v3186_v28 = vadd.f32 %v3185_v27, %v2423_v35  ;;  %v5881_v35 = vmax.f32 %v5880_v41, 0.0  ;;  %v4213_v32 = vld [vmem:[#allocation10 + $0x7e] ss:$0 sm:$0xff] }
 0x58f   :  { %v3187_v23 = vpop.f32.mrf.mxu0 }
 0x590   :  { %v3228_v1 = vpop.f32.mrf.mxu1  ;;  %v3255_v45 = vadd.f32 %v3248_v34, %v3225_v62  ;;  %v3227_v2 = vadd.f32 %v3226_v19, %v3186_v28  ;;  %v3641_v11 = vpop.permute.xlu0 %3640 }
 0x591   :  { %v3188_v57 = vpop.f32.mrf.mxu0 }
 0x592   :  { %v3229_v25 = vpop.f32.mrf.mxu1  ;;  %v3256_v48 = vadd.f32 %v3252_v36, %v3227_v2  ;;  %v3259_v49 = vmax.f32 %v3255_v45, 0.0 }
 0x594   :  { %v3260_v40 = vmax.f32 %v3256_v48, 0.0  ;;  %v3279_v60 = vpack.c.bf16 %v3259_v49, %v3259_v49  ;;  %v3637_v55 = vpop.permute.xlu0 %3636 }
 0x596   :  { %v3280_v38 = vpack.c.bf16 %v3260_v40, %v3260_v40 }
 0x598   :  { %3438 = vmatprep.mubr.bf16.mxu1 %v3280_v38 }
 0x599   :  { %3439 = vmatmul.mubr.bf16.vlgmr.msra.gmra.mxu1 %v3279_v60 }
 0x59a   :  { %4309 = vmatprep.mubr.msk.f32.mxu1 %vm4829_vm0, %v5878_v24  ;;  %4306 = vmatpush3.msk.msra.mxu1 %vm299_vm3, %v3536_v54 }
 0x59b   :  { %4307 = vmatprep.subr.mxu1 %v5878_v24 }
 0x59c   :  { %4308 = vmatpush3.msra.mxu1 %v3534_v42 }
 0x59d   :  { %4312 = vmatprep.subr.mxu1 %v5878_v24 }
 0x5a1   :  { %4310 = vmatmul.mubr.msk.f32.vlgmr.msra.gmra.mxu1 %vm3538_vm6, %v5881_v35 }
 0x5a2   :  { %4322 = vmatprep.mubr.msk.f32.mxu1 %vm4829_vm0, %v5878_v24  ;;  %4313 = vmatpush3.msra.mxu1 %v3645_v63 }
 0x5a3   :  { %4314 = vmatprep.subr.mxu1 %v5878_v24 }
 0x5a4   :  { %4315 = vmatpush3.msra.mxu1 %v3643_v31 }
 0x5a5   :  { %4316 = vmatprep.subr.mxu1 %v5878_v24 }
 0x5a6   :  { %4317 = vmatpush3.msra.mxu1 %v3641_v11 }
 0x5a7   :  { %4318 = vmatprep.subr.mxu1 %v5878_v24 }
 0x5a8   :  { %4319 = vmatpush3.msra.mxu1 %v3639_v13 }
 0x5a9   :  { %4320 = vmatprep.subr.mxu1 %v5878_v24 }
 0x5aa   :  { %4321 = vmatpush3.msra.mxu1 %v3637_v55 }
 0x619   :  { %v3400_v15 = vpop.f32.mrf.mxu0 }
 0x61a   :  { %v3401_v33 = vadd.f32 %v4190_v5, %v3400_v15 }
 0x61b   :  { %v3402_v37 = vpop.f32.mrf.mxu0 }
 0x61d   :  { %v3403_v43 = vpop.f32.mrf.mxu0 }
 0x61f   :  { %v3404_v59 = vpop.f32.mrf.mxu0 }
 0x659   :  { %v3440_v7 = vpop.f32.mrf.mxu1 }
 0x65a   :  { %v3441_v12 = vadd.f32 %v3440_v7, %v3401_v33 }
 0x65b   :  { %v3442_v20 = vpop.f32.mrf.mxu1 }
 0x65c   :  { %v3446_v22 = vmax.f32 %v3441_v12, 0.0 }
 0x65d   :  { %v3443_v26 = vpop.f32.mrf.mxu1 }
 0x65e   :  { %4303 = vmatmul.mubr.msk.f32.vlgmr.msra.gmra.mxu0 %vm3457_vm7, %v3446_v22 }
 0x65f   :  { %v3444_v50 = vpop.f32.mrf.mxu1  ;;  %4331 = vmatprep.mubr.msk.f32.mxu0 %vm4829_vm0, %v5878_v24  ;;  %4326 = vmatpush3.msk.msra.mxu0 %vm299_vm3, %v3728_v3 }
 0x660   :  { %4327 = vmatprep.subr.mxu0 %v5878_v24 }
 0x661   :  { %v3610_v6 = vpop.f32.mrf.mxu1  ;;  %4328 = vmatpush3.msra.mxu0 %v3727_v4 }
 0x662   :  { %4329 = vmatprep.subr.mxu0 %v5878_v24 }
 0x663   :  { %v4311_v16 = vpop.f32.mrf.mxu1  ;;  %4330 = vmatpush3.msra.mxu0 %v3726_v9 }
 0x71e   :  { %v3527_v61 = vpop.f32.mrf.mxu0 }
 0x71f   :  { %v3611_v8 = vadd.f32 %v3610_v6, %v3527_v61 }
 0x720   :  { %v4304_v18 = vpop.f32.mrf.mxu0 }
 0x721   :  { %v3619_v51 = vadd.f32 %v4210_v10, %v3611_v8 }
 0x723   :  { %v3620_v0 = vmax.f32 %v3619_v51, 0.0 }
 0x725   :  { %4323 = vmatmul.mubr.msk.f32.vlgmr.msra.gmra.mxu1 %vm3651_vm8, %v3620_v0 }
 0x7e5   :  { %v3721_v58 = vpop.f32.mrf.mxu1 }
 0x7e6   :  { %v3722_v46 = vadd.f32 %v4211_v53, %v3721_v58 }
 0x7e7   :  { %v4324_v44 = vpop.f32.mrf.mxu1 }
 0x7e8   :  { %v3725_v47 = vmax.f32 %v3722_v46, 0.0 }
 0x7ea   :  { %4332 = vmatmul.mubr.msk.f32.vlgmr.msra.gmra.mxu0 %vm295_vm4, %v3725_v47 }
 0x8aa   :  { %v3806_v34 = vpop.f32.mrf.mxu0 }
 0x8ab   :  { %v3807_v27 = vadd.f32 %v4213_v32, %v3806_v34 }
 0x8ac   :  { %v4333_v19 = vpop.f32.mrf.mxu0 }
 0x8ad   :  { %v3810_v62 = vmax.f32 %v3807_v27, 0.0 }
 0x8af   :  { %3811 = vst [vmem:[#allocation11] sm:$0x3] %v3810_v62 }
 0x8b0   :  { %4802 = shalt.err (!%p4799_p6)
}
 0x8b1   :  { %3821 = dma.vmem_to_hbm [thread:$0]  %s3819_s27, 32, %s5600_s5, [#allocation7]  }
 0x8b2   :  { %4821 = dma.done.wait [#allocation7], 32  }
 0x8b3   :  { %4822 = vsyncadd [#allocation7], 4294967264 }
 0x8b4   :  { %3825 = vsyncpa [#allocation6], 1 }
 0x8b5   :  { %3826 = vsyncpa [#allocation9], 1 }
 0x8b6   :  { %3827 = vsyncpa [#allocation7], 1 }
 0x8b7   :  { %3828 = vsyncmov [#allocation4] }
 0x8ba   :  { %s3829_s1 = vpop.sfrf %3828 }
 0x8bb   :  { %p4216_p7 = scmp.ne.s32.totalorder %s3829_s1, 0 }
 0x8bd   :  { %3833 = shalt.err (%p4216_p7)  }
 0x8be   :  { %3835 = vsyncmov [#allocation4 + $0x1] }
 0x8c1   :  { %s3836_s6 = vpop.sfrf %3835 }
 0x8c2   :  { %p4217_p8 = scmp.ne.s32.totalorder %s3836_s6, 0 }
 0x8c4   :  { %3840 = shalt.err (%p4217_p8)  }
 0x8c5   :  { %3842 = vsyncmov [#allocation4 + $0x2] }
 0x8c8   :  { %s3843_s7 = vpop.sfrf %3842 }
 0x8c9   :  { %p4218_p9 = scmp.ne.s32.totalorder %s3843_s7, 0 }
 0x8cb   :  { %3847 = shalt.err (%p4218_p9)  }

</bundles_post_ra>
